<compile_context>
chip_gen: v7x
topology: tpu7x:2x2x1
jax: 0.10.0
libtpu: 0.0.40
codegen_flags: <defaults>
</compile_context>

<pallas_src>
import functools

import jax
import jax.numpy as jnp
from jax.experimental import pallas as pl
from jax.experimental.pallas import tpu as pltpu


_VMEM_LIMIT = 32 * 1024 * 1024  # safe on v5e/v6e (128 MiB) and v7x (64 MiB)


def _round_up(x, m):
    return ((x + m - 1) // m) * m


def _pick_cout_tile(c):
    if c % 256 == 0:
        return 256
    if c % 128 == 0:
        return 128
    return c  # full dim (e.g. 64, 32, 8) is always a legal block size


def _pick_m_tile(m):
    if m <= 512:
        return m, m
    for t in (512, 256, 128):
        if m % t == 0:
            return t, m
    mp = _round_up(m, 512)
    return 512, mp


# ----------------------- 3x3 conv (+BN-shift, +ReLU) kernel -------------------
# The padded image is flattened per batch element to F = (P, Cin) with
# P = (H+2)*(W+2).  Output "band" index m = y*(W+2) + x; for tap (dy, dx) the
# source row is m + dy*(W+2) + dx, so every tap is a contiguous slice of F.
def _conv3x3_kernel(f_ref, w_ref, s_ref, o_ref, acc_ref, *, taps, apply_relu):
    mb = acc_ref.shape[0]
    for t, off in enumerate(taps):
        contrib = jnp.dot(f_ref[0, off:off + mb, :], w_ref[t],
                          preferred_element_type=jnp.float32)
        if t == 0:
            acc_ref[...] = contrib
        else:
            acc_ref[...] += contrib
    out = acc_ref[...] + s_ref[...]
    if apply_relu:
        out = jnp.maximum(out, 0.0)
    o_ref[0] = out.astype(o_ref.dtype)


def conv3x3(x, w9, shift, apply_relu=True):
    """x: (N,H,W,Cin); w9: (9,Cin,Cout) bf16 (BN-scaled); shift: (1,Cout) f32."""
    N, H, W, Cin = x.shape
    Cout = w9.shape[2]
    tn = _pick_cout_tile(Cout)
    Wp = W + 2
    P = (H + 2) * Wp
    Mb = H * Wp - 2                      # band length covering all valid pixels

    xp = jnp.pad(x.astype(jnp.bfloat16), ((0, 0), (1, 1), (1, 1), (0, 0)))
    f = xp.reshape(N, P, Cin)
    taps = tuple(dy * Wp + dx for dy in range(3) for dx in range(3))

    kernel = functools.partial(_conv3x3_kernel, taps=taps,
                               apply_relu=apply_relu)
    band = pl.pallas_call(
        kernel,
        out_shape=jax.ShapeDtypeStruct((N, Mb, Cout), jnp.bfloat16),
        grid_spec=pltpu.PrefetchScalarGridSpec(
            num_scalar_prefetch=0,
            # weight tile on the outer axis -> stays VMEM resident across batch
            grid=(Cout // tn, N),
            in_specs=[
                pl.BlockSpec((1, P, Cin), lambda j, n: (n, 0, 0)),
                pl.BlockSpec((9, Cin, tn), lambda j, n: (0, 0, j)),
                pl.BlockSpec((1, tn), lambda j, n: (0, j)),
            ],
            out_specs=pl.BlockSpec((1, Mb, tn), lambda j, n: (n, 0, j)),
            scratch_shapes=[pltpu.VMEM((Mb, tn), jnp.float32)],
        ),
        compiler_params=pltpu.CompilerParams(
            dimension_semantics=("parallel", "parallel"),
            vmem_limit_bytes=_VMEM_LIMIT),
    )(f, w9, shift)

    # Extract the valid (H, W) pixels from the band.
    full = jnp.pad(band, ((0, 0), (0, 2), (0, 0)))
    return full.reshape(N, H, Wp, Cout)[:, :, :W, :]


# --------------------------- plain matmul + bias kernel -----------------------
def _mm_kernel(a_ref, b_ref, s_ref, o_ref, *, apply_relu):
    acc = jnp.dot(a_ref[...], b_ref[...], preferred_element_type=jnp.float32)
    out = acc + s_ref[...]
    if apply_relu:
        out = jnp.maximum(out, 0.0)
    o_ref[...] = out.astype(o_ref.dtype)


def matmul_bias(a, b, shift, apply_relu=False, out_dtype=jnp.bfloat16):
    """out[M,Nout] = maybe_relu(a[M,K] @ b[K,Nout] + shift[1,Nout])."""
    M, K = a.shape
    Nout = b.shape[1]
    a = a.astype(jnp.bfloat16)
    tm, Mp = _pick_m_tile(M)
    tn = _pick_cout_tile(Nout)
    if Mp != M:
        a = jnp.pad(a, ((0, Mp - M), (0, 0)))

    out = pl.pallas_call(
        functools.partial(_mm_kernel, apply_relu=apply_relu),
        out_shape=jax.ShapeDtypeStruct((Mp, Nout), out_dtype),
        grid_spec=pltpu.PrefetchScalarGridSpec(
            num_scalar_prefetch=0,
            grid=(Nout // tn, Mp // tm),     # weight tile on outer axis
            in_specs=[
                pl.BlockSpec((tm, K), lambda j, i: (i, 0)),
                pl.BlockSpec((K, tn), lambda j, i: (0, j)),
                pl.BlockSpec((1, tn), lambda j, i: (0, j)),
            ],
            out_specs=pl.BlockSpec((tm, tn), lambda j, i: (i, j)),
        ),
        compiler_params=pltpu.CompilerParams(
            dimension_semantics=("parallel", "parallel"),
            vmem_limit_bytes=_VMEM_LIMIT),
    )(a, b, shift)
    return out[:M] if Mp != M else out


# ------------------------------ maxpool 2x2 kernel ----------------------------
# Input is pre-reshaped (free, contiguity-preserving) to (N*Ho, 2, Wo, 2, C)
# so the kernel only needs static integer indexing -- no strided ref slices,
# no in-kernel reshapes.
def _maxpool_kernel(x_ref, o_ref):
    a = x_ref[0, 0, :, 0, :]
    b = x_ref[0, 0, :, 1, :]
    c = x_ref[0, 1, :, 0, :]
    d = x_ref[0, 1, :, 1, :]
    o_ref[0] = jnp.maximum(jnp.maximum(a, b), jnp.maximum(c, d))


def maxpool2x2(x):  # x: (N, H, W, C) NHWC, H and W even
    N, H, W, C = x.shape
    Ho, Wo = H // 2, W // 2
    xr = x.reshape(N * Ho, 2, Wo, 2, C)
    out = pl.pallas_call(
        _maxpool_kernel,
        out_shape=jax.ShapeDtypeStruct((N * Ho, Wo, C), x.dtype),
        grid_spec=pltpu.PrefetchScalarGridSpec(
            num_scalar_prefetch=0,
            grid=(N * Ho,),
            in_specs=[pl.BlockSpec((1, 2, Wo, 2, C),
                                   lambda i: (i, 0, 0, 0, 0))],
            out_specs=pl.BlockSpec((1, Wo, C), lambda i: (i, 0, 0)),
        ),
        compiler_params=pltpu.CompilerParams(
            dimension_semantics=("parallel",),
            vmem_limit_bytes=_VMEM_LIMIT),
    )(xr)
    return out.reshape(N, Ho, Wo, C)


# ------------------------------ layer helpers ---------------------------------
def double_conv_apply(x, dp):
    x = conv3x3(x, *dp["c1"], apply_relu=True)
    x = conv3x3(x, *dp["c2"], apply_relu=True)
    return x


def conv_transpose2x2(x, wm, shift):
    # wm: (Cin, 4*Cout) with columns ordered (di, dj, cout); single matmul +
    # depth-to-space instead of 4 matmuls + strided scatters.
    N, H, W, Cin = x.shape
    Cout = wm.shape[1] // 4
    y = matmul_bias(x.reshape(N * H * W, Cin), wm, shift, apply_relu=False)
    y = y.reshape(N, H, W, 2, 2, Cout).transpose(0, 1, 3, 2, 4, 5)
    return y.reshape(N, 2 * H, 2 * W, Cout)


def conv1x1(x, wm, shift):
    N, H, W, Cin = x.shape
    Cout = wm.shape[1]
    y = matmul_bias(x.reshape(N * H * W, Cin), wm, shift,
                    apply_relu=False, out_dtype=jnp.float32)
    return y.reshape(N, H, W, Cout)


# ------------------------------ parameters ------------------------------------
def _init_conv(key, cin, cout, ksize):
    kw, kb = jax.random.split(key)
    fan_in = cin * ksize * ksize
    w = jax.random.normal(kw, (cout, cin, ksize, ksize),
                          jnp.float32) / jnp.sqrt(fan_in)
    b = 0.01 * jax.random.normal(kb, (cout,), jnp.float32)
    return w, b


def _init_bn(key, c):
    k1, k2, k3 = jax.random.split(key, 3)
    gamma = 1.0 + 0.1 * jax.random.normal(k1, (c,), jnp.float32)
    beta = 0.1 * jax.random.normal(k2, (c,), jnp.float32)
    mean = 0.1 * jax.random.normal(k3, (c,), jnp.float32)
    var = jnp.ones((c,), jnp.float32)
    return (gamma, beta, mean, var)


def _init_double_conv(key, cin, cout):
    k1, k2, k3, k4 = jax.random.split(key, 4)
    w1, b1 = _init_conv(k1, cin, cout, 3)
    w2, b2 = _init_conv(k3, cout, cout, 3)
    return dict(w1=w1, b1=b1, bn1=_init_bn(k2, cout),
                w2=w2, b2=b2, bn2=_init_bn(k4, cout))


def _init_convT(key, cin, cout):
    kw, kb = jax.random.split(key)
    w = jax.random.normal(kw, (cin, cout, 2, 2),
                          jnp.float32) / jnp.sqrt(cin * 4)
    b = 0.01 * jax.random.normal(kb, (cout,), jnp.float32)
    return w, b


def init_unet_params(key, n_channels=3, n_classes=8):
    keys = jax.random.split(key, 14)
    p = {}
    p["inc"] = _init_double_conv(keys[0], n_channels, 64)
    p["down1"] = _init_double_conv(keys[1], 64, 128)
    p["down2"] = _init_double_conv(keys[2], 128, 256)
    p["down3"] = _init_double_conv(keys[3], 256, 512)
    p["down4"] = _init_double_conv(keys[4], 512, 1024)
    p["up1"] = _init_convT(keys[5], 1024, 512)
    p["up_conv1"] = _init_double_conv(keys[6], 1024, 512)
    p["up2"] = _init_convT(keys[7], 512, 256)
    p["up_conv2"] = _init_double_conv(keys[8], 512, 256)
    p["up3"] = _init_convT(keys[9], 256, 128)
    p["up_conv3"] = _init_double_conv(keys[10], 256, 128)
    p["up4"] = _init_convT(keys[11], 128, 64)
    p["up_conv4"] = _init_double_conv(keys[12], 128, 64)
    p["outc"] = _init_conv(keys[13], 64, n_classes, 1)
    return p


# ---------------- one-time weight preparation (BN fold, bf16, layout) ---------
def _prep_conv_bn(w, b, bn, eps=1e-5):
    gamma, beta, mean, var = bn
    s = gamma / jnp.sqrt(var + eps)                       # (Cout,)
    cout, cin = w.shape[0], w.shape[1]
    w9 = jnp.transpose(w, (2, 3, 1, 0)).reshape(9, cin, cout)  # (dy,dx,ci,co)
    w9 = (w9 * s[None, None, :]).astype(jnp.bfloat16)
    shift = ((b - mean) * s + beta).astype(jnp.float32).reshape(1, cout)
    return w9, shift


def _prep_double_conv(p):
    return dict(c1=_prep_conv_bn(p["w1"], p["b1"], p["bn1"]),
                c2=_prep_conv_bn(p["w2"], p["b2"], p["bn2"]))


def _prep_convT(w, b):
    cin, cout = w.shape[0], w.shape[1]
    wm = jnp.transpose(w, (0, 2, 3, 1)).reshape(cin, 4 * cout)  # (ci,(di,dj,co))
    wm = wm.astype(jnp.bfloat16)
    shift = jnp.tile(b, 4).astype(jnp.float32).reshape(1, 4 * cout)
    return wm, shift


def _prep_conv1x1(w, b):
    cout, cin = w.shape[0], w.shape[1]
    wm = w.reshape(cout, cin).T.astype(jnp.bfloat16)
    shift = b.astype(jnp.float32).reshape(1, cout)
    return wm, shift


def prepare_unet_params(p):
    q = {}
    for name in ("inc", "down1", "down2", "down3", "down4",
                 "up_conv1", "up_conv2", "up_conv3", "up_conv4"):
        q[name] = _prep_double_conv(p[name])
    for name in ("up1", "up2", "up3", "up4"):
        q[name] = _prep_convT(*p[name])
    q["outc"] = _prep_conv1x1(*p["outc"])
    return q


# ------------------------------ forward pass ----------------------------------
def unet_forward(x_nchw, q):
    x = jnp.transpose(x_nchw, (0, 2, 3, 1)).astype(jnp.bfloat16)  # NCHW -> NHWC

    x1 = double_conv_apply(x, q["inc"])
    x2 = double_conv_apply(maxpool2x2(x1), q["down1"])
    x3 = double_conv_apply(maxpool2x2(x2), q["down2"])
    x4 = double_conv_apply(maxpool2x2(x3), q["down3"])
    x5 = double_conv_apply(maxpool2x2(x4), q["down4"])

    u = conv_transpose2x2(x5, *q["up1"])
    u = double_conv_apply(jnp.concatenate([x4, u], axis=-1), q["up_conv1"])
    u = conv_transpose2x2(u, *q["up2"])
    u = double_conv_apply(jnp.concatenate([x3, u], axis=-1), q["up_conv2"])
    u = conv_transpose2x2(u, *q["up3"])
    u = double_conv_apply(jnp.concatenate([x2, u], axis=-1), q["up_conv3"])
    u = conv_transpose2x2(u, *q["up4"])
    u = double_conv_apply(jnp.concatenate([x1, u], axis=-1), q["up_conv4"])

    out = conv1x1(u, *q["outc"])
    return jnp.transpose(out, (0, 3, 1, 2))  # NHWC -> NCHW


# ------------------------------ main / checks ---------------------------------
if __name__ == "__main__":
    key = jax.random.PRNGKey(0)
    kp, kx = jax.random.split(key)
    params = init_unet_params(kp, n_channels=3, n_classes=8)
    prepared = prepare_unet_params(params)

    kc1, kc2, kc3 = jax.random.split(kx, 3)

    # --- unit check: 3x3 band conv vs lax.conv (same bf16 operands) ----------
    xt = jax.random.normal(kc1, (2, 6, 10, 16), jnp.float32)
    wt = (0.1 * jax.random.normal(kc2, (9, 16, 64), jnp.float32)
          ).astype(jnp.bfloat16)
    st = 0.1 * jax.random.normal(kc3, (1, 64), jnp.float32)
    got = conv3x3(xt, wt, st, apply_relu=True).astype(jnp.float32)
    ref = jax.lax.conv_general_dilated(
        xt.astype(jnp.bfloat16).astype(jnp.float32),
        wt.astype(jnp.float32).reshape(3, 3, 16, 64),
        window_strides=(1, 1), padding="SAME",
        dimension_numbers=("NHWC", "HWIO", "NHWC"),
        precision=jax.lax.Precision.HIGHEST)
    ref = jnp.maximum(ref + st.reshape(1, 1, 1, 64), 0.0)
    ref = ref.astype(jnp.bfloat16).astype(jnp.float32)
    assert bool(jnp.allclose(got, ref, rtol=5e-2, atol=5e-2)), "conv3x3 check"

    # --- unit check: maxpool2x2 ------------------------------------------------
    xm = jax.random.normal(kc1, (2, 8, 12, 32), jnp.float32).astype(jnp.bfloat16)
    gp = maxpool2x2(xm)
    rp = jnp.max(xm.reshape(2, 4, 2, 6, 2, 32), axis=(2, 4))
    assert bool(jnp.array_equal(gp, rp)), "maxpool2x2 check"

    # --- unit check: conv_transpose2x2 vs per-corner reference ----------------
    xu = jax.random.normal(kc2, (2, 4, 5, 16), jnp.float32).astype(jnp.bfloat16)
    wT = 0.1 * jax.random.normal(kc3, (16, 8, 2, 2), jnp.float32)
    bT = 0.1 * jax.random.normal(kc1, (8,), jnp.float32)
    wmT, shT = _prep_convT(wT, bT)
    gu = conv_transpose2x2(xu, wmT, shT).astype(jnp.float32)
    x32 = xu.astype(jnp.float32)
    w32 = wT.astype(jnp.bfloat16).astype(jnp.float32)
    ru = jnp.zeros((2, 8, 10, 8), jnp.float32)
    for di in range(2):
        for dj in range(2):
            blk = jnp.einsum("nhwc,cd->nhwd", x32, w32[:, :, di, dj],
                             precision=jax.lax.Precision.HIGHEST) + bT
            ru = ru.at[:, di::2, dj::2, :].set(blk)
    ru = ru.astype(jnp.bfloat16).astype(jnp.float32)
    assert bool(jnp.allclose(gu, ru, rtol=5e-2, atol=5e-2)), "conv_transpose check"

    # --- full UNet forward -----------------------------------------------------
    x = jax.random.normal(kx, (2, 3, 16, 16), jnp.float32)  # NCHW like PyTorch
    fwd = jax.jit(unet_forward)
    out = jax.block_until_ready(fwd(x, prepared))
    assert out.shape == (2, 8, 16, 16), out.shape
    assert bool(jnp.all(jnp.isfinite(out)))
    print("KERNEL_OK")
</pallas_src>

<mosaic_0001>
module attributes {stable_mosaic.version = 11 : i64} {
  func.func @_conv3x3_kernel(%arg0: i32, %arg1: i32, %arg2: memref<1x96x16xbf16, #tpu.memory_space<vmem>>, %arg3: memref<9x16x64xbf16, #tpu.memory_space<vmem>>, %arg4: memref<1x64xf32, #tpu.memory_space<vmem>>, %arg5: memref<1x70x64xbf16, #tpu.memory_space<vmem>>, %arg6: memref<70x64xf32, #tpu.memory_space<vmem>>) attributes {dimension_semantics = [#tpu.dimension_semantics<parallel>, #tpu.dimension_semantics<parallel>], iteration_bounds = array<i64: 1, 2>, scalar_prefetch = 0 : i64, scratch_operands = 1 : i64, tpu.core_type = #tpu.core_type<tc>, window_params = [{transform_indices = @transform_0, window_bounds = array<i64: 1, 96, 16>}, {transform_indices = @transform_1, window_bounds = array<i64: 9, 16, 64>}, {transform_indices = @transform_2, window_bounds = array<i64: 1, 64>}, {transform_indices = @transform_3, window_bounds = array<i64: 1, 70, 64>}]} {
    %c0 = arith.constant 0 : index
    %c0_0 = arith.constant 0 : index
    %c0_1 = arith.constant 0 : index
    %0 = vector.load %arg2[%c0, %c0_0, %c0_1] : memref<1x96x16xbf16, #tpu.memory_space<vmem>>, vector<1x70x16xbf16>
    %1 = vector.shape_cast %0 : vector<1x70x16xbf16> to vector<70x16xbf16>
    %c0_2 = arith.constant 0 : index
    %c0_3 = arith.constant 0 : index
    %c0_4 = arith.constant 0 : index
    %2 = vector.load %arg3[%c0_2, %c0_3, %c0_4] : memref<9x16x64xbf16, #tpu.memory_space<vmem>>, vector<1x16x64xbf16>
    %3 = vector.shape_cast %2 : vector<1x16x64xbf16> to vector<16x64xbf16>
    %cst = arith.constant dense<0.000000e+00> : vector<70x64xf32>
    %4 = tpu.matmul %1, %3, %cst {dimension_numbers = #tpu.dot_dimension_numbers<[1], [0], [0], [1], [0, 0, 1, 1], [], []>} : vector<70x16xbf16>, vector<16x64xbf16>, vector<70x64xf32> -> vector<70x64xf32>
    %c0_5 = arith.constant 0 : index
    %c0_6 = arith.constant 0 : index
    %5 = vector.load %arg6[%c0_5, %c0_6] : memref<70x64xf32, #tpu.memory_space<vmem>>, vector<70x64xf32>
    tpu.vector_store %arg6[%c0_5, %c0_6], %4 {strides = array<i32>} : memref<70x64xf32, #tpu.memory_space<vmem>>, vector<70x64xf32>,
    %c0_7 = arith.constant 0 : index
    %c1 = arith.constant 1 : index
    %c0_8 = arith.constant 0 : index
    %6 = vector.load %arg2[%c0_7, %c1, %c0_8] : memref<1x96x16xbf16, #tpu.memory_space<vmem>>, vector<1x70x16xbf16>
    %7 = vector.shape_cast %6 : vector<1x70x16xbf16> to vector<70x16xbf16>
    %c1_9 = arith.constant 1 : index
    %c0_10 = arith.constant 0 : index
    %c0_11 = arith.constant 0 : index
    %8 = vector.load %arg3[%c1_9, %c0_10, %c0_11] : memref<9x16x64xbf16, #tpu.memory_space<vmem>>, vector<1x16x64xbf16>
    %9 = vector.shape_cast %8 : vector<1x16x64xbf16> to vector<16x64xbf16>
    %cst_12 = arith.constant dense<0.000000e+00> : vector<70x64xf32>
    %10 = tpu.matmul %7, %9, %cst_12 {dimension_numbers = #tpu.dot_dimension_numbers<[1], [0], [0], [1], [0, 0, 1, 1], [], []>} : vector<70x16xbf16>, vector<16x64xbf16>, vector<70x64xf32> -> vector<70x64xf32>
    %c0_13 = arith.constant 0 : index
    %c0_14 = arith.constant 0 : index
    %11 = vector.load %arg6[%c0_13, %c0_14] : memref<70x64xf32, #tpu.memory_space<vmem>>, vector<70x64xf32>
    %12 = arith.addf %11, %10 : vector<70x64xf32>
    %c0_15 = arith.constant 0 : index
    %c0_16 = arith.constant 0 : index
    %13 = vector.load %arg6[%c0_15, %c0_16] : memref<70x64xf32, #tpu.memory_space<vmem>>, vector<70x64xf32>
    tpu.vector_store %arg6[%c0_15, %c0_16], %12 {strides = array<i32>} : memref<70x64xf32, #tpu.memory_space<vmem>>, vector<70x64xf32>,
    %c0_17 = arith.constant 0 : index
    %c2 = arith.constant 2 : index
    %c0_18 = arith.constant 0 : index
    %14 = vector.load %arg2[%c0_17, %c2, %c0_18] : memref<1x96x16xbf16, #tpu.memory_space<vmem>>, vector<1x70x16xbf16>
    %15 = vector.shape_cast %14 : vector<1x70x16xbf16> to vector<70x16xbf16>
    %c2_19 = arith.constant 2 : index
    %c0_20 = arith.constant 0 : index
    %c0_21 = arith.constant 0 : index
    %16 = vector.load %arg3[%c2_19, %c0_20, %c0_21] : memref<9x16x64xbf16, #tpu.memory_space<vmem>>, vector<1x16x64xbf16>
    %17 = vector.shape_cast %16 : vector<1x16x64xbf16> to vector<16x64xbf16>
    %cst_22 = arith.constant dense<0.000000e+00> : vector<70x64xf32>
    %18 = tpu.matmul %15, %17, %cst_22 {dimension_numbers = #tpu.dot_dimension_numbers<[1], [0], [0], [1], [0, 0, 1, 1], [], []>} : vector<70x16xbf16>, vector<16x64xbf16>, vector<70x64xf32> -> vector<70x64xf32>
    %c0_23 = arith.constant 0 : index
    %c0_24 = arith.constant 0 : index
    %19 = vector.load %arg6[%c0_23, %c0_24] : memref<70x64xf32, #tpu.memory_space<vmem>>, vector<70x64xf32>
    %20 = arith.addf %19, %18 : vector<70x64xf32>
    %c0_25 = arith.constant 0 : index
    %c0_26 = arith.constant 0 : index
    %21 = vector.load %arg6[%c0_25, %c0_26] : memref<70x64xf32, #tpu.memory_space<vmem>>, vector<70x64xf32>
    tpu.vector_store %arg6[%c0_25, %c0_26], %20 {strides = array<i32>} : memref<70x64xf32, #tpu.memory_space<vmem>>, vector<70x64xf32>,
    %c0_27 = arith.constant 0 : index
    %c12 = arith.constant 12 : index
    %c0_28 = arith.constant 0 : index
    %22 = vector.load %arg2[%c0_27, %c12, %c0_28] : memref<1x96x16xbf16, #tpu.memory_space<vmem>>, vector<1x70x16xbf16>
    %23 = vector.shape_cast %22 : vector<1x70x16xbf16> to vector<70x16xbf16>
    %c3 = arith.constant 3 : index
    %c0_29 = arith.constant 0 : index
    %c0_30 = arith.constant 0 : index
    %24 = vector.load %arg3[%c3, %c0_29, %c0_30] : memref<9x16x64xbf16, #tpu.memory_space<vmem>>, vector<1x16x64xbf16>
    %25 = vector.shape_cast %24 : vector<1x16x64xbf16> to vector<16x64xbf16>
    %cst_31 = arith.constant dense<0.000000e+00> : vector<70x64xf32>
    %26 = tpu.matmul %23, %25, %cst_31 {dimension_numbers = #tpu.dot_dimension_numbers<[1], [0], [0], [1], [0, 0, 1, 1], [], []>} : vector<70x16xbf16>, vector<16x64xbf16>, vector<70x64xf32> -> vector<70x64xf32>
    %c0_32 = arith.constant 0 : index
    %c0_33 = arith.constant 0 : index
    %27 = vector.load %arg6[%c0_32, %c0_33] : memref<70x64xf32, #tpu.memory_space<vmem>>, vector<70x64xf32>
    %28 = arith.addf %27, %26 : vector<70x64xf32>
    %c0_34 = arith.constant 0 : index
    %c0_35 = arith.constant 0 : index
    %29 = vector.load %arg6[%c0_34, %c0_35] : memref<70x64xf32, #tpu.memory_space<vmem>>, vector<70x64xf32>
    tpu.vector_store %arg6[%c0_34, %c0_35], %28 {strides = array<i32>} : memref<70x64xf32, #tpu.memory_space<vmem>>, vector<70x64xf32>,
    %c0_36 = arith.constant 0 : index
    %c13 = arith.constant 13 : index
    %c0_37 = arith.constant 0 : index
    %30 = vector.load %arg2[%c0_36, %c13, %c0_37] : memref<1x96x16xbf16, #tpu.memory_space<vmem>>, vector<1x70x16xbf16>
    %31 = vector.shape_cast %30 : vector<1x70x16xbf16> to vector<70x16xbf16>
    %c4 = arith.constant 4 : index
    %c0_38 = arith.constant 0 : index
    %c0_39 = arith.constant 0 : index
    %32 = vector.load %arg3[%c4, %c0_38, %c0_39] : memref<9x16x64xbf16, #tpu.memory_space<vmem>>, vector<1x16x64xbf16>
    %33 = vector.shape_cast %32 : vector<1x16x64xbf16> to vector<16x64xbf16>
    %cst_40 = arith.constant dense<0.000000e+00> : vector<70x64xf32>
    %34 = tpu.matmul %31, %33, %cst_40 {dimension_numbers = #tpu.dot_dimension_numbers<[1], [0], [0], [1], [0, 0, 1, 1], [], []>} : vector<70x16xbf16>, vector<16x64xbf16>, vector<70x64xf32> -> vector<70x64xf32>
    %c0_41 = arith.constant 0 : index
    %c0_42 = arith.constant 0 : index
    %35 = vector.load %arg6[%c0_41, %c0_42] : memref<70x64xf32, #tpu.memory_space<vmem>>, vector<70x64xf32>
    %36 = arith.addf %35, %34 : vector<70x64xf32>
    %c0_43 = arith.constant 0 : index
    %c0_44 = arith.constant 0 : index
    %37 = vector.load %arg6[%c0_43, %c0_44] : memref<70x64xf32, #tpu.memory_space<vmem>>, vector<70x64xf32>
    tpu.vector_store %arg6[%c0_43, %c0_44], %36 {strides = array<i32>} : memref<70x64xf32, #tpu.memory_space<vmem>>, vector<70x64xf32>,
    %c0_45 = arith.constant 0 : index
    %c14 = arith.constant 14 : index
    %c0_46 = arith.constant 0 : index
    %38 = vector.load %arg2[%c0_45, %c14, %c0_46] : memref<1x96x16xbf16, #tpu.memory_space<vmem>>, vector<1x70x16xbf16>
    %39 = vector.shape_cast %38 : vector<1x70x16xbf16> to vector<70x16xbf16>
    %c5 = arith.constant 5 : index
    %c0_47 = arith.constant 0 : index
    %c0_48 = arith.constant 0 : index
    %40 = vector.load %arg3[%c5, %c0_47, %c0_48] : memref<9x16x64xbf16, #tpu.memory_space<vmem>>, vector<1x16x64xbf16>
    %41 = vector.shape_cast %40 : vector<1x16x64xbf16> to vector<16x64xbf16>
    %cst_49 = arith.constant dense<0.000000e+00> : vector<70x64xf32>
    %42 = tpu.matmul %39, %41, %cst_49 {dimension_numbers = #tpu.dot_dimension_numbers<[1], [0], [0], [1], [0, 0, 1, 1], [], []>} : vector<70x16xbf16>, vector<16x64xbf16>, vector<70x64xf32> -> vector<70x64xf32>
    %c0_50 = arith.constant 0 : index
    %c0_51 = arith.constant 0 : index
    %43 = vector.load %arg6[%c0_50, %c0_51] : memref<70x64xf32, #tpu.memory_space<vmem>>, vector<70x64xf32>
    %44 = arith.addf %43, %42 : vector<70x64xf32>
    %c0_52 = arith.constant 0 : index
    %c0_53 = arith.constant 0 : index
    %45 = vector.load %arg6[%c0_52, %c0_53] : memref<70x64xf32, #tpu.memory_space<vmem>>, vector<70x64xf32>
    tpu.vector_store %arg6[%c0_52, %c0_53], %44 {strides = array<i32>} : memref<70x64xf32, #tpu.memory_space<vmem>>, vector<70x64xf32>,
    %c0_54 = arith.constant 0 : index
    %c24 = arith.constant 24 : index
    %c0_55 = arith.constant 0 : index
    %46 = vector.load %arg2[%c0_54, %c24, %c0_55] : memref<1x96x16xbf16, #tpu.memory_space<vmem>>, vector<1x70x16xbf16>
    %47 = vector.shape_cast %46 : vector<1x70x16xbf16> to vector<70x16xbf16>
    %c6 = arith.constant 6 : index
    %c0_56 = arith.constant 0 : index
    %c0_57 = arith.constant 0 : index
    %48 = vector.load %arg3[%c6, %c0_56, %c0_57] : memref<9x16x64xbf16, #tpu.memory_space<vmem>>, vector<1x16x64xbf16>
    %49 = vector.shape_cast %48 : vector<1x16x64xbf16> to vector<16x64xbf16>
    %cst_58 = arith.constant dense<0.000000e+00> : vector<70x64xf32>
    %50 = tpu.matmul %47, %49, %cst_58 {dimension_numbers = #tpu.dot_dimension_numbers<[1], [0], [0], [1], [0, 0, 1, 1], [], []>} : vector<70x16xbf16>, vector<16x64xbf16>, vector<70x64xf32> -> vector<70x64xf32>
    %c0_59 = arith.constant 0 : index
    %c0_60 = arith.constant 0 : index
    %51 = vector.load %arg6[%c0_59, %c0_60] : memref<70x64xf32, #tpu.memory_space<vmem>>, vector<70x64xf32>
    %52 = arith.addf %51, %50 : vector<70x64xf32>
    %c0_61 = arith.constant 0 : index
    %c0_62 = arith.constant 0 : index
    %53 = vector.load %arg6[%c0_61, %c0_62] : memref<70x64xf32, #tpu.memory_space<vmem>>, vector<70x64xf32>
    tpu.vector_store %arg6[%c0_61, %c0_62], %52 {strides = array<i32>} : memref<70x64xf32, #tpu.memory_space<vmem>>, vector<70x64xf32>,
    %c0_63 = arith.constant 0 : index
    %c25 = arith.constant 25 : index
    %c0_64 = arith.constant 0 : index
    %54 = vector.load %arg2[%c0_63, %c25, %c0_64] : memref<1x96x16xbf16, #tpu.memory_space<vmem>>, vector<1x70x16xbf16>
    %55 = vector.shape_cast %54 : vector<1x70x16xbf16> to vector<70x16xbf16>
    %c7 = arith.constant 7 : index
    %c0_65 = arith.constant 0 : index
    %c0_66 = arith.constant 0 : index
    %56 = vector.load %arg3[%c7, %c0_65, %c0_66] : memref<9x16x64xbf16, #tpu.memory_space<vmem>>, vector<1x16x64xbf16>
    %57 = vector.shape_cast %56 : vector<1x16x64xbf16> to vector<16x64xbf16>
    %cst_67 = arith.constant dense<0.000000e+00> : vector<70x64xf32>
    %58 = tpu.matmul %55, %57, %cst_67 {dimension_numbers = #tpu.dot_dimension_numbers<[1], [0], [0], [1], [0, 0, 1, 1], [], []>} : vector<70x16xbf16>, vector<16x64xbf16>, vector<70x64xf32> -> vector<70x64xf32>
    %c0_68 = arith.constant 0 : index
    %c0_69 = arith.constant 0 : index
    %59 = vector.load %arg6[%c0_68, %c0_69] : memref<70x64xf32, #tpu.memory_space<vmem>>, vector<70x64xf32>
    %60 = arith.addf %59, %58 : vector<70x64xf32>
    %c0_70 = arith.constant 0 : index
    %c0_71 = arith.constant 0 : index
    %61 = vector.load %arg6[%c0_70, %c0_71] : memref<70x64xf32, #tpu.memory_space<vmem>>, vector<70x64xf32>
    tpu.vector_store %arg6[%c0_70, %c0_71], %60 {strides = array<i32>} : memref<70x64xf32, #tpu.memory_space<vmem>>, vector<70x64xf32>,
    %c0_72 = arith.constant 0 : index
    %c26 = arith.constant 26 : index
    %c0_73 = arith.constant 0 : index
    %62 = vector.load %arg2[%c0_72, %c26, %c0_73] : memref<1x96x16xbf16, #tpu.memory_space<vmem>>, vector<1x70x16xbf16>
    %63 = vector.shape_cast %62 : vector<1x70x16xbf16> to vector<70x16xbf16>
    %c8 = arith.constant 8 : index
    %c0_74 = arith.constant 0 : index
    %c0_75 = arith.constant 0 : index
    %64 = vector.load %arg3[%c8, %c0_74, %c0_75] : memref<9x16x64xbf16, #tpu.memory_space<vmem>>, vector<1x16x64xbf16>
    %65 = vector.shape_cast %64 : vector<1x16x64xbf16> to vector<16x64xbf16>
    %cst_76 = arith.constant dense<0.000000e+00> : vector<70x64xf32>
    %66 = tpu.matmul %63, %65, %cst_76 {dimension_numbers = #tpu.dot_dimension_numbers<[1], [0], [0], [1], [0, 0, 1, 1], [], []>} : vector<70x16xbf16>, vector<16x64xbf16>, vector<70x64xf32> -> vector<70x64xf32>
    %c0_77 = arith.constant 0 : index
    %c0_78 = arith.constant 0 : index
    %67 = vector.load %arg6[%c0_77, %c0_78] : memref<70x64xf32, #tpu.memory_space<vmem>>, vector<70x64xf32>
    %68 = arith.addf %67, %66 : vector<70x64xf32>
    %c0_79 = arith.constant 0 : index
    %c0_80 = arith.constant 0 : index
    %69 = vector.load %arg6[%c0_79, %c0_80] : memref<70x64xf32, #tpu.memory_space<vmem>>, vector<70x64xf32>
    tpu.vector_store %arg6[%c0_79, %c0_80], %68 {strides = array<i32>} : memref<70x64xf32, #tpu.memory_space<vmem>>, vector<70x64xf32>,
    %c0_81 = arith.constant 0 : index
    %c0_82 = arith.constant 0 : index
    %70 = vector.load %arg6[%c0_81, %c0_82] : memref<70x64xf32, #tpu.memory_space<vmem>>, vector<70x64xf32>
    %c0_83 = arith.constant 0 : index
    %c0_84 = arith.constant 0 : index
    %71 = vector.load %arg4[%c0_83, %c0_84] : memref<1x64xf32, #tpu.memory_space<vmem>>, vector<1x64xf32>
    %72 = vector.broadcast %71 : vector<1x64xf32> to vector<70x64xf32>
    %73 = arith.addf %70, %72 : vector<70x64xf32>
    %cst_85 = arith.constant 0.000000e+00 : f32
    %74 = vector.broadcast %cst_85 : f32 to vector<70x64xf32>
    %75 = arith.maximumf %73, %74 : vector<70x64xf32>
    %76 = arith.truncf %75 : vector<70x64xf32> to vector<70x64xbf16>
    %c0_86 = arith.constant 0 : index
    %c0_87 = arith.constant 0 : index
    %c0_88 = arith.constant 0 : index
    %77 = vector.load %arg5[%c0_86, %c0_87, %c0_88] : memref<1x70x64xbf16, #tpu.memory_space<vmem>>, vector<1x70x64xbf16>
    %78 = vector.shape_cast %77 : vector<1x70x64xbf16> to vector<70x64xbf16>
    %79 = vector.shape_cast %76 : vector<70x64xbf16> to vector<1x70x64xbf16>
    tpu.vector_store %arg5[%c0_86, %c0_87, %c0_88], %79 {strides = array<i32>} : memref<1x70x64xbf16, #tpu.memory_space<vmem>>, vector<1x70x64xbf16>,
    return
  }
  func.func @transform_0(%arg0: i32, %arg1: i32) -> (i32, i32, i32) {
    %c0_i32 = arith.constant 0 : i32
    %c0_i32_0 = arith.constant 0 : i32
    %c0_i32_1 = arith.constant 0 : i32
    return %arg1, %c0_i32, %c0_i32_0 : i32, i32, i32
  }
  func.func @transform_1(%arg0: i32, %arg1: i32) -> (i32, i32, i32) {
    %c0_i32 = arith.constant 0 : i32
    %c0_i32_0 = arith.constant 0 : i32
    %c0_i32_1 = arith.constant 0 : i32
    return %c0_i32, %c0_i32_0, %arg0 : i32, i32, i32
  }
  func.func @transform_2(%arg0: i32, %arg1: i32) -> (i32, i32) {
    %c0_i32 = arith.constant 0 : i32
    %c0_i32_0 = arith.constant 0 : i32
    return %c0_i32, %arg0 : i32, i32
  }
  func.func @transform_3(%arg0: i32, %arg1: i32) -> (i32, i32, i32) {
    %c0_i32 = arith.constant 0 : i32
    %c0_i32_0 = arith.constant 0 : i32
    return %arg1, %c0_i32, %arg0 : i32, i32, i32
  }
}

</mosaic_0001>

<bundles_post_ra>
// kernel: tpu_custom_call.1
= control target key start
LH: loop header
LB: loop body
LE: loop exit
PB: predicated region body
PF: predicated region fallthrough
CT: control target
= control target key end

     0   :  { %s2488_s12 = smov 0   ;;  %s2490_s13 = smov 0   ;;  %s2947_s0 = inlined_call_operand.vmem [shape: bf16[2,96,16], index: 0, kind: input, shape index: {}]   ;;  %s2948_s1 = inlined_call_operand.vmem [shape: bf16[9,16,64], index: 1, kind: input, shape index: {}]   ;;  %s2949_s2 = inlined_call_operand.vmem [shape: f32[1,64], index: 2, kind: input, shape index: {}]   ;;  %s2950_s3 = inlined_call_operand.vmem [shape: bf16[2,70,64], index: 3, kind: output, shape index: {}]  }
   0x1   :  { %s2492_s14 = smov 0  }
   0x2 LB: > { %s22_s15 = sadd.s32 1, %s2460_s13  ;;  %p1967_p0 = scmp.ge.s32.totalorder %s2464_s14, 1  ;;  %s2464_s14 = sphi %s2492_s14, %s13_s14   ;;  %s2460_s13 = sphi %s2490_s13, %s2952_s13   ;;  %s2456_s12 = sphi %s2488_s12, %s2951_s12  }
   0x3   : > { %p23_p1 = scmp.ge.s32.totalorder %s22_s15, 2  ;;  %p168_p2 = scmp.lt.s32.totalorder %s2464_s14, 3 }
   0x5   : > { %s2954_s15 = smov (%p23_p1, %s22_s15), 0  ;;  %p169_p3 = pnand %p1967_p0, %p168_p2 }
   0x6   : > { %v2388_v0 = vld [vmem:[%s2948_s1] sm:$0xff] (!%p169_p3)   ;;  %v2466_v1 = vmov (!%p169_p3), 0.0   ;;  %p202_p4 = scmp.lt.s32.totalorder (!%p169_p3), %s2456_s12, 1  ;;  %vm2467_vm0 = vmmov (!%p169_p3), 0   ;;  %v2391_v2 = vld [vmem:[%s2948_s1 + $0x8] sm:$0xff] (!%p169_p3)   ;;  %vm263_vm1 = vcmask (!%p169_p3), 130048  }
   0x7   : > { %172 = sbr.rel (%p169_p3) target bundleno = 427 (0x1ab), region = 32  ;;  %2358 = vmatprep.subr.bf16.mxu1 (!%p169_p3), %v2466_v1  ;;  %2160 = vmatprep.subr.bf16.mxu0 (!%p169_p3), %v2466_v1  ;;  %v2392_v3 = vld [vmem:[%s2948_s1 + $0x10] sm:$0xff] (!%p169_p3)   ;;  %vm397_vm2 = vsmask.f32 (!%p169_p3), 7424  ;;  %v2398_v21 = vld [vmem:[%s2948_s1 + $0x18] sm:$0xff] (!%p169_p3)   ;;  %vm592_vm3 = vcmask (!%p169_p3), 1046528  }
   0x8   : > { %2359 = vmatpush3.bf16.msra.mxu1 (!%p169_p3), %v2388_v0  ;;  %2161 = vmatpush3.bf16.msra.mxu0 (!%p169_p3), %v2388_v0  ;;  %v2402_v29 = vld [vmem:[%s2948_s1 + $0x20] sm:$0xff] (!%p169_p3)   ;;  %vm760_vm4 = vcmask (!%p169_p3), 1045504   ;;  %vm928_vm5 = vsmask.f32 (!%p169_p3), 5376  ;;  %vm1131_vm6 = vcmask (!%p169_p3), 1044480   ;;  %vm351_vm7 = vcmask (!%p169_p3), 523264  }
   0x9   : > { %2162 = vmatprep.mubr.msk.bf16.mxu0 (!%p169_p3), %vm2467_vm0, %v2466_v1  ;;  %2174 = vmatprep.mubr.msk.bf16.mxu1 (!%p169_p3), %vm2467_vm0, %v2466_v1  ;;  %vm360_vm8 = vcmask (!%p169_p3), 521216   ;;  %vm1845_vm9 = vcmask (!%p169_p3), 519168   ;;  %vm1854_vm10 = vcmask (!%p169_p3), 518144  }
   0xa   : > { %2182 = vmatprep.subr.bf16.mxu1 (!%p169_p3), %v2466_v1  ;;  %2204 = vmatprep.subr.bf16.mxu0 (!%p169_p3), %v2466_v1 }
   0xe   : > { %s2956_s12 = smov (!%p202_p4, %s2456_s12), 1 }
   0xf   : > { %s2360_s18 = smul.u32 48, %s2956_s12 }
  0x10   : > { %s2361_s17 = smul.u32 36, %s2956_s12 }
  0x11   : > { %s2526_s23 = scalar_lea.vmem %s2947_s0, %s2360_s18 }
  0x12   : > { %v2389_v4 = vld [vmem:[%s2526_s23] sm:$0xff]   ;;  %v2390_v5 = vld [vmem:[%s2526_s23 + $0x18] sm:$0xff]   ;;  %v2393_v6 = vld [vmem:[%s2526_s23 + $0x8] sm:$0xff]   ;;  %s2904_s12 = scalar_lea.vmem %s2950_s3, %s2361_s17 }
  0x13   : > { %2163 = vmatmul.mubr.msk.bf16.vlgmr.msra.gmra.mrb[0].mxu0 %vm263_vm1, %v2389_v4  ;;  %2175 = vmatmul.mubr.msk.bf16.vlgmr.msra.gmra.mrb[0].mxu1 %vm263_vm1, %v2390_v5  ;;  %v2394_v7 = vld [vmem:[%s2526_s23 + $0x20] ss:$0 sps:$4 sm:$0x77]   ;;  %v2397_v9 = vld [vmem:[%s2526_s23 + $0x8] sm:$0xff]   ;;  %v2399_v16 = vld [vmem:[%s2526_s23 + $0x10] sm:$0xff]  }
  0x14   : > { %2205 = vmatpush3.bf16.msra.mxu0 %v2392_v3  ;;  %2183 = vmatpush3.bf16.msra.mxu1 %v2391_v2  ;;  %v2396_v8 = vld [vmem:[%s2526_s23] sm:$0xff]   ;;  %v406_v12 = vshll.u32 %v2397_v9, 16  ;;  %v2395_v17 = vld [vmem:[%s2526_s23 + $0x10] sm:$0xff]   ;;  %v2401_v18 = vld [vmem:[%s2526_s23 + $0x8] sm:$0xff]   ;;  %v410_v22 = vshrl.u32 %v2397_v9, 16  ;;  %v414_v23 = vshll.u32 %v2399_v16, 16 }
  0x15   : > { %2166 = vmatprep.mubr.msk.bf16.mxu0 %vm2467_vm0, %v2466_v1  ;;  %2178 = vmatprep.mubr.msk.bf16.mxu1 %vm2467_vm0, %v2466_v1  ;;  %v399_v10 = vshrl.u32 %v2396_v8, 16  ;;  %v401_v11 = vshll.u32 %v2396_v8, 16  ;;  %v2400_v19 = vld [vmem:[%s2526_s23] sm:$0xfe]   ;;  %v594_v25 = vrot.slane %v2401_v18, 1  ;;  %v2403_v28 = vld [vmem:[%s2526_s23 + $0x18] sm:$0xff]  }
  0x16   : > { %2226 = vmatprep.subr.bf16.mxu1 %v2466_v1  ;;  %2248 = vmatprep.subr.bf16.mxu0 %v2466_v1  ;;  %v408_v15 = vrot.slane %v406_v12, 1  ;;  %v593_v24 = vrot.slane %v2400_v19, 1  ;;  %v416_v27 = vrot.slane %v414_v23, 1  ;;  %v2404_v31 = vld [vmem:[%s2526_s23 + $0x10] sm:$0xff]   ;;  %v418_v33 = vshrl.u32 %v2399_v16, 16  ;;  %v2406_v39 = vld [vmem:[%s2526_s23 + $0x18] sm:$0xff]  }
  0x17   : > { %v403_v13 = vrot.slane %v401_v11, 1  ;;  %v422_v34 = vshll.u32 %v2403_v28, 16  ;;  %v596_v35 = vrot.slane %v2404_v31, 1  ;;  %v2405_v36 = vld [vmem:[%s2526_s23 + $0x20] ss:$0 sps:$4 sm:$0xff]   ;;  %v426_v41 = vshrl.u32 %v2403_v28, 16 }
  0x18   : > { %v412_v26 = vor.u32 %v410_v22, %v408_v15  ;;  %v595_v30 = vsel %vm592_vm3, %v593_v24, %v594_v25  ;;  %v420_v37 = vor.u32 %v418_v33, %v416_v27  ;;  %v430_v42 = vshll.u32 %v2405_v36, 16  ;;  %v2586_v45 = vld [vmem:[%s2526_s23 + $0xc] sm:$0xff]   ;;  %v2592_v46 = vld [vmem:[%s2526_s23 + $0x20] ss:$0 sps:$4 sm:$0xff]   ;;  %v2600_v50 = vld [vmem:[%s2526_s23 + $0x4] sm:$0xfc]  }
  0x19   : > { %v404_v14 = vor.u32 %v403_v13, %v399_v10  ;;  %v424_v38 = vrot.slane %v422_v34, 1  ;;  %v597_v40 = vsel %vm592_vm3, %v594_v25, %v596_v35  ;;  %v598_v44 = vrot.slane %v2406_v39, 1  ;;  %v2597_v49 = vld [vmem:[%s2526_s23 + $0xc] sm:$0xff]   ;;  %v2433_v60 = vld [vmem:[%s2526_s23 + $0x14] sm:$0xff]   ;;  %v2434_v63 = vld [vmem:[%s2526_s23 + $0x1c] sm:$0xff]  }
  0x1a   : > { %v417_v32 = vsel %vm397_vm2, %v412_v26, %v416_v27  ;;  %v432_v48 = vrot.slane %v430_v42, 1  ;;  %v434_v51 = vshrl.u32 %v2405_v36, 16  ;;  %v600_v54 = vrot.slane %v2592_v46, 1  ;;  %v2432_v59 = vld [vmem:[%s2526_s23 + $0xc] sm:$0xff]   ;;  %v2436_v8 = vld [vmem:[%s2526_s23 + $0x14] sm:$0xff]   ;;  %v2437_v16 = vld [vmem:[%s2526_s23 + $0x24] sm:$0xff]  }
  0x1b   : > { %2167 = vmatmul.mubr.msk.bf16.gmra.mrb[4].mxu0 %vm263_vm1, %v2393_v6  ;;  %2179 = vmatmul.mubr.msk.bf16.gmra.mrb[4].mxu1 %vm263_vm1, %v2394_v7  ;;  %v409_v20 = vsel %vm397_vm2, %v404_v14, %v408_v15  ;;  %v425_v43 = vsel %vm397_vm2, %v420_v37, %v424_v38  ;;  %v428_v47 = vor.u32 %v426_v41, %v424_v38  ;;  %v762_v55 = vrot.slane %v2586_v45, 2  ;;  %v2408_v6 = vld [vmem:[%s2526_s23 + $0x4] sm:$0xfc]   ;;  %v2435_v7 = vld [vmem:[%s2526_s23 + $0xc] sm:$0xfe]  }
  0x1c   : > { %2170 = vmatprep.mubr.msk.bf16.mxu0 %vm2467_vm0, %v2466_v1  ;;  %2184 = vmatprep.mubr.msk.bf16.mxu1 %vm2467_vm0, %v2466_v1  ;;  %v599_v52 = vsel %vm592_vm3, %v596_v35, %v598_v44  ;;  %v930_v56 = vshrl.u32 %v2600_v50, 16  ;;  %v938_v57 = vshrl.u32 %v2597_v49, 16  ;;  %v941_v58 = vshll.u32 %v2597_v49, 16  ;;  %v2440_v26 = vld [vmem:[%s2526_s23 + $0x24] sm:$0xff]   ;;  %v2651_v34 = vld [vmem:[%s2526_s23 + $0x2c] ss:$0 sps:$4 sm:$0xff]  }
  0x1d   : > { %v433_v53 = vsel %vm397_vm2, %v428_v47, %v432_v48  ;;  %v1452_v61 = vshrl.u32 %v2432_v59, 16  ;;  %v1454_v62 = vshll.u32 %v2432_v59, 16  ;;  %v1459_v2 = vshll.u32 %v2433_v60, 16  ;;  %v2411_v49 = vld [vmem:[%s2526_s23 + $0x14] sm:$0xff]  }
  0x1e   : > { %v1463_v3 = vshrl.u32 %v2433_v60, 16  ;;  %v1467_v4 = vshll.u32 %v2434_v63, 16  ;;  %v436_v5 = vor.u32 %v434_v51, %v432_v48  ;;  %v1471_v9 = vshrl.u32 %v2434_v63, 16  ;;  %v2410_v48 = vld [vmem:[%s2948_s1 + $0x28] sm:$0xff]   ;;  %v2415_v63 = vld [vmem:[%s2526_s23 + $0x1c] sm:$0xff]  }
  0x1f   : > { %v1456_v0 = vrot.slane %v1454_v62, 1  ;;  %v601_v10 = vsel %vm592_vm3, %v598_v44, %v600_v54  ;;  %v1461_v12 = vrot.slane %v1459_v2, 1  ;;  %v1645_v14 = vrot.slane %v2435_v7, 1  ;;  %v2416_v44 = vld [vmem:[%s2526_s23 + $0x14] sm:$0xff]  }
  0x20   : > { %v1469_v13 = vrot.slane %v1467_v4, 1  ;;  %v1646_v15 = vrot.slane %v2436_v8, 1  ;;  %v1475_v23 = vshll.u32 %v2437_v16, 16  ;;  %v1479_v25 = vshrl.u32 %v2437_v16, 16  ;;  %v2417_v8 = vld [vmem:[%s2526_s23 + $0x24] sm:$0x1f]  }
  0x21   : > { %v1457_v11 = vor.u32 %v1456_v0, %v1452_v61  ;;  %v1465_v19 = vor.u32 %v1463_v3, %v1461_v12  ;;  %v933_v27 = vshll.u32 %v2600_v50, 16  ;;  %v1650_v33 = vrot.slane %v2440_v26, 1  ;;  %v2418_v61 = vld [vmem:[%s2526_s23 + $0x1c] sm:$0xff]  }
  0x22   : > { %v2634_v22 = vsel %vm592_vm3, %v1645_v14, %v1646_v15  ;;  %v1477_v31 = vrot.slane %v1475_v23, 1  ;;  %v1652_v39 = vrot.slane %v2651_v34, 1  ;;  %v940_v42 = vrot.slane %v938_v57, 2  ;;  %v2421_v23 = vld [vmem:[%s2526_s23 + $0xc] sm:$0xff]  }
  0x23   : > { %2171 = vmatmul.mubr.msk.bf16.gmra.mrb[8].mxu0 %vm263_vm1, %v2395_v17  ;;  %2185 = vmatmul.mubr.msk.bf16.vlgmr.msra.gmra.mrb[8].mxu1 %vm263_vm1, %v409_v20  ;;  %v2438_v17 = vld [vmem:[%s2526_s23 + $0x1c] sm:$0xff]   ;;  %v2627_v18 = vsel %vm397_vm2, %v1457_v11, %v1461_v12  ;;  %v1473_v20 = vor.u32 %v1471_v9, %v1469_v13  ;;  %v2642_v28 = vsel %vm397_vm2, %v1465_v19, %v1469_v13  ;;  %v935_v41 = vrot.slane %v933_v27, 3 }
  0x24   : > { %2206 = vmatprep.mubr.msk.bf16.mxu0 %vm2467_vm0, %v2466_v1  ;;  %2227 = vmatpush3.bf16.msra.mxu1 %v2398_v21  ;;  %v2630_v21 = vld [vmem:[%s2526_s23 + $0x2c] ss:$0 sps:$4 sm:$0xff]   ;;  %v1648_v24 = vrot.slane %v2438_v17, 1  ;;  %v1481_v37 = vor.u32 %v1479_v25, %v1477_v31  ;;  %v2677_v51 = vsel %vm592_vm3, %v1650_v33, %v1652_v39  ;;  %v950_v57 = vshll.u32 %v2416_v44, 16  ;;  %v2422_v27 = vld [vmem:[%s2948_s1 + $0x38] sm:$0xff]  }
  0x25   : > { %2188 = vmatprep.mubr.msk.bf16.mxu1 %vm2467_vm0, %v2466_v1  ;;  %2270 = vmatprep.subr.bf16.mxu1 %v2466_v1  ;;  %v2656_v36 = vsel %vm397_vm2, %v1473_v20, %v1477_v31  ;;  %v956_v2 = vshrl.u32 %v2418_v61, 16  ;;  %v959_v3 = vshll.u32 %v2418_v61, 16  ;;  %v766_v45 = vrot.slane %v2415_v63, 2  ;;  %v2420_v20 = vld [vmem:[%s2526_s23 + $0x4] sm:$0xf8]   ;;  %v2424_v31 = vld [vmem:[%s2526_s23 + $0xc] sm:$0xff]  }
  0x26   : > { %v2659_v38 = vsel %vm592_vm3, %v1648_v24, %v1650_v33  ;;  %v952_v60 = vrot.slane %v950_v57, 3  ;;  %v768_v12 = vrot.slane %v2417_v8, 2  ;;  %v1133_v25 = vrot.slane %v2421_v23, 3  ;;  %v2425_v33 = vld [vmem:[%s2948_s1 + $0x40] sm:$0xff]  }
  0x27   : > { %v958_v4 = vrot.slane %v956_v2, 2 }
  0x28   : > { %v769_v16 = vsel %vm760_vm4, %v766_v45, %v768_v12 }
  0x2b   : > { %2207 = vmatmul.mubr.msk.bf16.vlgmr.msra.gmra.mrb[12].mxu0 %vm263_vm1, %v595_v30  ;;  %2189 = vmatmul.mubr.msk.bf16.gmra.mrb[12].mxu1 %vm263_vm1, %v417_v32  ;;  %v761_v30 = vrot.slane %v2408_v6, 2  ;;  %v2648_v32 = vsel %vm592_vm3, %v1646_v15, %v1648_v24  ;;  %v2419_v6 = vld [vmem:[%s2526_s23 + $0x24] sm:$0x3f]   ;;  %v1132_v24 = vrot.slane %v2420_v20, 3 }
  0x2c   : > { %2249 = vmatpush3.bf16.msra.mxu0 %v2402_v29  ;;  %2192 = vmatprep.mubr.msk.bf16.mxu1 %vm2467_vm0, %v2466_v1  ;;  %v1483_v29 = vshll.u32 %v2630_v21, 16  ;;  %v968_v11 = vshll.u32 %v2419_v6, 16 }
  0x2d   : > { %2210 = vmatprep.mubr.msk.bf16.mxu0 %vm2467_vm0, %v2466_v1  ;;  %2292 = vmatprep.subr.bf16.mxu0 %v2466_v1  ;;  %v763_v47 = vsel %vm760_vm4, %v761_v30, %v762_v55  ;;  %v1134_v26 = vsel %vm1131_vm6, %v1132_v24, %v1133_v25 }
  0x2e   : > { %v2653_v35 = vrot.slane %v1483_v29, 1  ;;  %v970_v15 = vrot.slane %v968_v11, 3  ;;  %v2423_v29 = vld [vmem:[%s2526_s23 + $0x14] sm:$0xff]  }
  0x2f   : > { %v1135_v30 = vrot.slane %v2423_v29, 3 }
  0x30   : > { %v2672_v50 = vsel %vm397_vm2, %v1481_v37, %v2653_v35 }
  0x31   : > { %v1136_v37 = vsel %vm1131_vm6, %v1133_v25, %v1135_v30 }
  0x33   : > { %2211 = vmatmul.mubr.msk.bf16.gmra.mrb[16].mxu0 %vm263_vm1, %v597_v40  ;;  %2193 = vmatmul.mubr.msk.bf16.gmra.mrb[16].mxu1 %vm263_vm1, %v425_v43  ;;  %v932_v40 = vrot.slane %v930_v56, 2  ;;  %v943_v43 = vrot.slane %v941_v58, 3  ;;  %v947_v56 = vshrl.u32 %v2416_v44, 16  ;;  %v764_v58 = vrot.slane %v2411_v49, 2  ;;  %v2428_v44 = vld [vmem:[%s2526_s23 + $0x24] sm:$0x3f]  }
  0x34   : > { %2214 = vmatprep.mubr.msk.bf16.mxu0 %vm2467_vm0, %v2466_v1  ;;  %2196 = vmatprep.mubr.msk.bf16.mxu1 %vm2467_vm0, %v2466_v1 }
  0x35   : > { %v949_v59 = vrot.slane %v947_v56, 2  ;;  %v765_v62 = vsel %vm760_vm4, %v762_v55, %v764_v58  ;;  %v767_v7 = vsel %vm760_vm4, %v764_v58, %v766_v45 }
  0x37   : > { %v953_v0 = vor.u32 %v952_v60, %v949_v59 }
  0x3b   : > { %2215 = vmatmul.mubr.msk.bf16.gmra.mrb[20].mxu0 %vm263_vm1, %v599_v52  ;;  %2197 = vmatmul.mubr.msk.bf16.gmra.mrb[20].mxu1 %vm263_vm1, %v433_v53  ;;  %v936_v52 = vor.u32 %v935_v41, %v932_v40  ;;  %v944_v53 = vor.u32 %v943_v43, %v940_v42  ;;  %v2426_v40 = vld [vmem:[%s2526_s23 + $0x1c] sm:$0xff]   ;;  %v2427_v42 = vld [vmem:[%s2526_s23 + $0x14] sm:$0xff]  }
  0x3c   : > { %2218 = vmatprep.mubr.msk.bf16.mxu0 %vm2467_vm0, %v2466_v1  ;;  %2200 = vmatprep.mubr.msk.bf16.mxu1 %vm2467_vm0, %v2466_v1  ;;  %v1137_v41 = vrot.slane %v2426_v40, 3 }
  0x3d   : > { %v945_v46 = vsel %vm928_vm5, %v936_v52, %v944_v53  ;;  %v954_v55 = vsel %vm928_vm5, %v944_v53, %v953_v0  ;;  %v2430_v52 = vld [vmem:[%s2526_s23 + $0x24] sm:$0xff]   ;;  %v2431_v53 = vld [vmem:[%s2526_s23 + $0x2c] ss:$0 sps:$4 sm:$0x77]  }
  0x3e   : > { %v1138_v43 = vsel %vm1131_vm6, %v1135_v30, %v1137_v41 }
  0x43   : > { %2219 = vmatmul.mubr.msk.bf16.gmra.mrb[24].mxu0 %vm263_vm1, %v601_v10  ;;  %2201 = vmatmul.mubr.msk.bf16.gmra.mrb[24].mxu1 %vm263_vm1, %v436_v5  ;;  %v961_v5 = vrot.slane %v959_v3, 3  ;;  %v965_v10 = vshrl.u32 %v2419_v6, 16 }
  0x44   : > { %2222 = vmatprep.mubr.msk.bf16.mxu0 %vm2467_vm0, %v2466_v1  ;;  %2228 = vmatprep.mubr.msk.bf16.mxu1 %vm2467_vm0, %v2466_v1 }
  0x45   : > { %v962_v9 = vor.u32 %v961_v5, %v958_v4  ;;  %v967_v14 = vrot.slane %v965_v10, 2 }
  0x47   : > { %v963_v13 = vsel %vm928_vm5, %v953_v0, %v962_v9  ;;  %v971_v17 = vor.u32 %v970_v15, %v967_v14 }
  0x49   : > { %v972_v19 = vsel %vm928_vm5, %v962_v9, %v971_v17 }
  0x4b   : > { %2223 = vmatmul.mubr.msk.bf16.gmra.mrb[28].mxu0 %vm263_vm1, %v600_v54  ;;  %2229 = vmatmul.mubr.msk.bf16.vlgmr.msra.gmra.mrb[28].mxu1 %vm263_vm1, %v763_v47  ;;  %v2414_v54 = vld [vmem:[%s2948_s1 + $0x30] sm:$0xff]   ;;  %v1139_v47 = vrot.slane %v2428_v44, 3 }
  0x4c   : > { %2250 = vmatprep.mubr.msk.bf16.mxu0 %vm2467_vm0, %v2466_v1  ;;  %2271 = vmatpush3.bf16.msra.mxu1 %v2410_v48  ;;  %v2429_v48 = vld [vmem:[%s2526_s23 + $0x1c] sm:$0xff]  }
  0x4d   : > { %2232 = vmatprep.mubr.msk.bf16.mxu1 %vm2467_vm0, %v2466_v1  ;;  %2314 = vmatprep.subr.bf16.mxu1 %v2466_v1  ;;  %v1140_v49 = vsel %vm1131_vm6, %v1137_v41, %v1139_v47 }
  0x53   : > { %2251 = vmatmul.mubr.msk.bf16.vlgmr.msra.gmra.mrb[32].mxu0 %vm263_vm1, %v945_v46  ;;  %2233 = vmatmul.mubr.msk.bf16.gmra.mrb[32].mxu1 %vm263_vm1, %v765_v62 }
  0x54   : > { %2293 = vmatpush3.bf16.msra.mxu0 %v2414_v54  ;;  %2236 = vmatprep.mubr.msk.bf16.mxu1 %vm2467_vm0, %v2466_v1 }
  0x55   : > { %2254 = vmatprep.mubr.msk.bf16.mxu0 %vm2467_vm0, %v2466_v1  ;;  %2336 = vmatprep.subr.bf16.mxu0 %v2466_v1 }
  0x5b   : > { %2255 = vmatmul.mubr.msk.bf16.gmra.mrb[36].mxu0 %vm263_vm1, %v954_v55  ;;  %2237 = vmatmul.mubr.msk.bf16.gmra.mrb[36].mxu1 %vm263_vm1, %v767_v7 }
  0x5c   : > { %2258 = vmatprep.mubr.msk.bf16.mxu0 %vm2467_vm0, %v2466_v1  ;;  %2240 = vmatprep.mubr.msk.bf16.mxu1 %vm2467_vm0, %v2466_v1 }
  0x63   : > { %2259 = vmatmul.mubr.msk.bf16.gmra.mrb[40].mxu0 %vm263_vm1, %v963_v13  ;;  %2241 = vmatmul.mubr.msk.bf16.gmra.mrb[40].mxu1 %vm263_vm1, %v769_v16 }
  0x64   : > { %2262 = vmatprep.mubr.msk.bf16.mxu0 %vm2467_vm0, %v2466_v1  ;;  %2244 = vmatprep.mubr.msk.bf16.mxu1 %vm2467_vm0, %v2466_v1 }
  0x6b   : > { %2263 = vmatmul.mubr.msk.bf16.gmra.mrb[44].mxu0 %vm263_vm1, %v972_v19  ;;  %2245 = vmatmul.mubr.msk.bf16.gmra.mrb[44].mxu1 %vm263_vm1, %v768_v12 }
  0x6c   : > { %2266 = vmatprep.mubr.msk.bf16.mxu0 %vm2467_vm0, %v2466_v1  ;;  %2272 = vmatprep.mubr.msk.bf16.mxu1 %vm2467_vm0, %v2466_v1 }
  0x73   : > { %2267 = vmatmul.mubr.msk.bf16.gmra.mrb[48].mxu0 %vm263_vm1, %v971_v17  ;;  %2273 = vmatmul.mubr.msk.bf16.vlgmr.msra.gmra.mrb[48].mxu1 %vm263_vm1, %v1134_v26 }
  0x74   : > { %2294 = vmatprep.mubr.msk.bf16.mxu0 %vm2467_vm0, %v2466_v1  ;;  %2315 = vmatpush3.bf16.msra.mxu1 %v2422_v27 }
  0x75   : > { %2276 = vmatprep.mubr.msk.bf16.mxu1 %vm2467_vm0, %v2466_v1 }
  0x7b   : > { %2295 = vmatmul.mubr.msk.bf16.vlgmr.msra.gmra.mrb[52].mxu0 %vm263_vm1, %v2424_v31  ;;  %2277 = vmatmul.mubr.msk.bf16.gmra.mrb[52].mxu1 %vm263_vm1, %v1136_v37 }
  0x7c   : > { %2337 = vmatpush3.bf16.msra.mxu0 %v2425_v33  ;;  %2280 = vmatprep.mubr.msk.bf16.mxu1 %vm2467_vm0, %v2466_v1 }
  0x7d   : > { %2298 = vmatprep.mubr.msk.bf16.mxu0 %vm2467_vm0, %v2466_v1 }
  0x83   : > { %2299 = vmatmul.mubr.msk.bf16.gmra.mrb[56].mxu0 %vm263_vm1, %v2427_v42  ;;  %2281 = vmatmul.mubr.msk.bf16.gmra.mrb[56].mxu1 %vm263_vm1, %v1138_v43 }
  0x84   : > { %2302 = vmatprep.mubr.msk.bf16.mxu0 %vm2467_vm0, %v2466_v1  ;;  %2284 = vmatprep.mubr.msk.bf16.mxu1 %vm2467_vm0, %v2466_v1 }
  0x8b   : > { %2303 = vmatmul.mubr.msk.bf16.gmra.mrb[60].mxu0 %vm263_vm1, %v2429_v48  ;;  %2285 = vmatmul.mubr.msk.bf16.gmra.mrb[60].mxu1 %vm263_vm1, %v1140_v49 }
  0x8c   : > { %2306 = vmatprep.mubr.msk.bf16.mxu0 %vm2467_vm0, %v2466_v1  ;;  %2288 = vmatprep.mubr.msk.bf16.mxu1 %vm2467_vm0, %v2466_v1 }
  0x93   : > { %2307 = vmatmul.mubr.msk.bf16.gmra.mrb[64].mxu0 %vm263_vm1, %v2430_v52  ;;  %2289 = vmatmul.mubr.msk.bf16.gmra.mrb[64].mxu1 %vm263_vm1, %v1139_v47 }
  0x94   : > { %2310 = vmatprep.mubr.msk.bf16.mxu0 %vm2467_vm0, %v2466_v1  ;;  %2316 = vmatprep.mubr.msk.bf16.mxu1 %vm2467_vm0, %v2466_v1 }
  0x9b   : > { %2311 = vmatmul.mubr.msk.bf16.gmra.mrb[68].mxu0 %vm263_vm1, %v2431_v53  ;;  %2317 = vmatmul.mubr.msk.bf16.vlgmr.msra.gmra.mrb[68].mxu1 %vm263_vm1, %v2627_v18  ;;  %v1487_v18 = vshrl.u32 %v2630_v21, 16 }
  0x9c   : > { %2338 = vmatprep.mubr.msk.bf16.mxu0 %vm2467_vm0, %v2466_v1  ;;  %2320 = vmatprep.mubr.msk.bf16.mxu1 %vm2467_vm0, %v2466_v1 }
  0xa3   : > { %2339 = vmatmul.mubr.msk.bf16.vlgmr.msra.gmra.mrb[72].mxu0 %vm263_vm1, %v2634_v22  ;;  %2321 = vmatmul.mubr.msk.bf16.gmra.mrb[72].mxu1 %vm263_vm1, %v2642_v28  ;;  %v1489_v22 = vor.u32 %v1487_v18, %v2653_v35 }
  0xa4   : > { %2342 = vmatprep.mubr.msk.bf16.mxu0 %vm2467_vm0, %v2466_v1  ;;  %2324 = vmatprep.mubr.msk.bf16.mxu1 %vm2467_vm0, %v2466_v1 }
  0xab   : > { %2343 = vmatmul.mubr.msk.bf16.gmra.mrb[76].mxu0 %vm263_vm1, %v2648_v32  ;;  %2325 = vmatmul.mubr.msk.bf16.gmra.mrb[76].mxu1 %vm263_vm1, %v2656_v36 }
  0xac   : > { %2346 = vmatprep.mubr.msk.bf16.mxu0 %vm2467_vm0, %v2466_v1  ;;  %2328 = vmatprep.mubr.msk.bf16.mxu1 %vm2467_vm0, %v2466_v1 }
  0xb3   : > { %2347 = vmatmul.mubr.msk.bf16.gmra.mrb[80].mxu0 %vm263_vm1, %v2659_v38  ;;  %2329 = vmatmul.mubr.msk.bf16.gmra.mrb[80].mxu1 %vm263_vm1, %v2672_v50 }
  0xb4   : > { %2350 = vmatprep.mubr.msk.bf16.mxu0 %vm2467_vm0, %v2466_v1  ;;  %2332 = vmatprep.mubr.msk.bf16.mxu1 %vm2467_vm0, %v2466_v1 }
  0xbb   : > { %2351 = vmatmul.mubr.msk.bf16.gmra.mrb[84].mxu0 %vm263_vm1, %v2677_v51  ;;  %2333 = vmatmul.mubr.msk.bf16.gmra.mrb[84].mxu1 %vm263_vm1, %v1489_v22 }
  0xbc   : > { %2354 = vmatprep.mubr.msk.bf16.mxu0 %vm2467_vm0, %v2466_v1 }
  0xc3   : > { %2355 = vmatmul.mubr.msk.bf16.gmra.mrb[88].mxu0 %vm263_vm1, %v1652_v39 }
  0xe6   : > { %v313_v28 = vpop.f32.mrb[0].mxu0  ;;  %v337_v21 = vpop.f32.mrb[0].mxu1 }
  0xe7   : > { %352 = vst.msk [vmem:[#allocation2] sm:$0xff] %vm351_vm7, %v313_v28  ;;  %v2164_v32 = vpop.f32.mrb[1].mxu0  ;;  %358 = vst.msk [vmem:[#allocation2 + $0x30] sm:$0xff] %vm351_vm7, %v337_v21  ;;  %v2176_v35 = vpop.f32.mrb[1].mxu1 }
  0xe8   : > { %v316_v36 = vpop.f32.mrb[2].mxu0  ;;  %v340_v38 = vpop.f32.mrb[2].mxu1 }
  0xe9   : > { %353 = vst.msk [vmem:[#allocation2 + $0x8] sm:$0xff] %vm351_vm7, %v316_v36  ;;  %v2165_v50 = vpop.f32.mrb[3].mxu0  ;;  %359 = vst.msk [vmem:[#allocation2 + $0x38] sm:$0xff] %vm351_vm7, %v340_v38  ;;  %v2177_v1 = vpop.f32.mrb[3].mxu1 }
  0xee   : > { %v321_v34 = vpop.f32.mrb[4].mxu0  ;;  %v345_v39 = vpop.f32.mrb[4].mxu1  ;;  %v530_v61 = vld [vmem:[#allocation2] sm:$0xff]  ;;  %v536_v18 = vld [vmem:[#allocation2 + $0x30] sm:$0xff] }
  0xef   : > { %354 = vst.msk [vmem:[#allocation2 + $0x10] sm:$0xff] %vm351_vm7, %v321_v34  ;;  %v2168_v51 = vpop.f32.mrb[5].mxu0  ;;  %v2180_v56 = vpop.f32.mrb[5].mxu1 }
  0xf0   : > { %361 = vst.msk [vmem:[#allocation2 + $0x40] sm:$0x3f] %vm360_vm8, %v345_v39  ;;  %v324_v57 = vpop.f32.mrb[6].mxu0  ;;  %v348_v58 = vpop.f32.mrb[6].mxu1  ;;  %v531_v45 = vld [vmem:[#allocation2 + $0x8] sm:$0xff]  ;;  %v537_v38 = vld [vmem:[#allocation2 + $0x38] sm:$0xff] }
  0xf1   : > { %355 = vst.msk [vmem:[#allocation2 + $0x18] sm:$0xff] %vm351_vm7, %v324_v57  ;;  %v2169_v46 = vpop.f32.mrb[7].mxu0  ;;  %v2181_v54 = vpop.f32.mrb[7].mxu1 }
  0xf6   : > { %v329_v59 = vpop.f32.mrb[8].mxu0  ;;  %v492_v60 = vpop.f32.mrb[8].mxu1  ;;  %v532_v8 = vld [vmem:[#allocation2 + $0x10] sm:$0xff] }
  0xf7   : > { %356 = vst.msk [vmem:[#allocation2 + $0x20] sm:$0xff] %vm351_vm7, %v329_v59  ;;  %v2172_v62 = vpop.f32.mrb[9].mxu0  ;;  %v539_v63 = vadd.f32 %v530_v61, %v492_v60  ;;  %v2186_v0 = vpop.f32.mrb[9].mxu1  ;;  %v538_v46 = vld [vmem:[#allocation2 + $0x40] sm:$0x3f] }
  0xf8   : > { %v332_v2 = vpop.f32.mrb[10].mxu0  ;;  %v495_v3 = vpop.f32.mrb[10].mxu1  ;;  %v533_v15 = vld [vmem:[#allocation2 + $0x18] sm:$0xff] }
  0xf9   : > { %357 = vst.msk [vmem:[#allocation2 + $0x28] sm:$0xff] %vm351_vm7, %v332_v2  ;;  %v2173_v55 = vpop.f32.mrb[11].mxu0  ;;  %548 = vst.msk [vmem:[#allocation2] sm:$0xff] %vm351_vm7, %v539_v63  ;;  %v540_v4 = vadd.f32 %v531_v45, %v495_v3  ;;  %v2187_v5 = vpop.f32.mrb[11].mxu1 }
  0xfb   : > { %549 = vst.msk [vmem:[#allocation2 + $0x8] sm:$0xff] %vm351_vm7, %v540_v4 }
  0xfe   : > { %v657_v6 = vpop.f32.mrb[12].mxu0  ;;  %v500_v7 = vpop.f32.mrb[12].mxu1  ;;  %v534_v27 = vld [vmem:[#allocation2 + $0x20] sm:$0xff] }
  0xff   : > { %v2208_v9 = vpop.f32.mrb[13].mxu0  ;;  %v541_v10 = vadd.f32 %v532_v8, %v500_v7  ;;  %v2190_v11 = vpop.f32.mrb[13].mxu1 }
 0x100   : > { %v660_v12 = vpop.f32.mrb[14].mxu0  ;;  %v695_v13 = vld [vmem:[#allocation2] sm:$0xff]  ;;  %v503_v14 = vpop.f32.mrb[14].mxu1  ;;  %v535_v41 = vld [vmem:[#allocation2 + $0x28] sm:$0xff] }
 0x101   : > { %v2209_v16 = vpop.f32.mrb[15].mxu0  ;;  %550 = vst.msk [vmem:[#allocation2 + $0x10] sm:$0xff] %vm351_vm7, %v541_v10  ;;  %v704_v17 = vadd.f32 %v695_v13, %v657_v6  ;;  %v542_v19 = vadd.f32 %v533_v15, %v503_v14  ;;  %v2191_v20 = vpop.f32.mrb[15].mxu1 }
 0x102   : > { %v696_v23 = vld [vmem:[#allocation2 + $0x8] sm:$0xff] }
 0x103   : > { %713 = vst.msk [vmem:[#allocation2] sm:$0xff] %vm351_vm7, %v704_v17  ;;  %551 = vst.msk [vmem:[#allocation2 + $0x18] sm:$0xff] %vm351_vm7, %v542_v19  ;;  %v705_v24 = vadd.f32 %v696_v23, %v660_v12 }
 0x105   : > { %714 = vst.msk [vmem:[#allocation2 + $0x8] sm:$0xff] %vm351_vm7, %v705_v24 }
 0x106   : > { %v665_v25 = vpop.f32.mrb[16].mxu0  ;;  %v508_v26 = vpop.f32.mrb[16].mxu1 }
 0x107   : > { %v2212_v29 = vpop.f32.mrb[17].mxu0  ;;  %v543_v30 = vadd.f32 %v534_v27, %v508_v26  ;;  %v2194_v31 = vpop.f32.mrb[17].mxu1 }
 0x108   : > { %v668_v33 = vpop.f32.mrb[18].mxu0  ;;  %v697_v37 = vld [vmem:[#allocation2 + $0x10] sm:$0xff]  ;;  %v511_v40 = vpop.f32.mrb[18].mxu1 }
 0x109   : > { %v2213_v42 = vpop.f32.mrb[19].mxu0  ;;  %552 = vst.msk [vmem:[#allocation2 + $0x20] sm:$0xff] %vm351_vm7, %v543_v30  ;;  %v706_v43 = vadd.f32 %v697_v37, %v665_v25  ;;  %v544_v44 = vadd.f32 %v535_v41, %v511_v40  ;;  %v2195_v47 = vpop.f32.mrb[19].mxu1 }
 0x10a   : > { %v698_v48 = vld [vmem:[#allocation2 + $0x18] sm:$0xff]  ;;  %v863_v6 = vld [vmem:[#allocation2] sm:$0xff] }
 0x10b   : > { %715 = vst.msk [vmem:[#allocation2 + $0x10] sm:$0xff] %vm351_vm7, %v706_v43  ;;  %553 = vst.msk [vmem:[#allocation2 + $0x28] sm:$0xff] %vm351_vm7, %v544_v44  ;;  %v707_v49 = vadd.f32 %v698_v48, %v668_v33 }
 0x10c   : > { %v864_v13 = vld [vmem:[#allocation2 + $0x8] sm:$0xff] }
 0x10d   : > { %716 = vst.msk [vmem:[#allocation2 + $0x18] sm:$0xff] %vm351_vm7, %v707_v49 }
 0x10e   : > { %v673_v52 = vpop.f32.mrb[20].mxu0  ;;  %v516_v53 = vpop.f32.mrb[20].mxu1 }
 0x10f   : > { %v2216_v22 = vpop.f32.mrb[21].mxu0  ;;  %v545_v28 = vadd.f32 %v536_v18, %v516_v53  ;;  %v2198_v21 = vpop.f32.mrb[21].mxu1 }
 0x110   : > { %v676_v32 = vpop.f32.mrb[22].mxu0  ;;  %v699_v35 = vld [vmem:[#allocation2 + $0x20] sm:$0xff]  ;;  %v519_v36 = vpop.f32.mrb[22].mxu1 }
 0x111   : > { %v2217_v50 = vpop.f32.mrb[23].mxu0  ;;  %554 = vst.msk [vmem:[#allocation2 + $0x30] sm:$0xff] %vm351_vm7, %v545_v28  ;;  %v708_v1 = vadd.f32 %v699_v35, %v673_v52  ;;  %v546_v34 = vadd.f32 %v537_v38, %v519_v36  ;;  %v2199_v39 = vpop.f32.mrb[23].mxu1 }
 0x112   : > { %v700_v51 = vld [vmem:[#allocation2 + $0x28] sm:$0xff]  ;;  %v865_v23 = vld [vmem:[#allocation2 + $0x10] sm:$0xff] }
 0x113   : > { %717 = vst.msk [vmem:[#allocation2 + $0x20] sm:$0xff] %vm351_vm7, %v708_v1  ;;  %555 = vst.msk [vmem:[#allocation2 + $0x38] sm:$0xff] %vm351_vm7, %v546_v34  ;;  %v709_v56 = vadd.f32 %v700_v51, %v676_v32 }
 0x114   : > { %v866_v31 = vld [vmem:[#allocation2 + $0x18] sm:$0xff] }
 0x115   : > { %718 = vst.msk [vmem:[#allocation2 + $0x28] sm:$0xff] %vm351_vm7, %v709_v56 }
 0x116   : > { %v681_v57 = vpop.f32.mrb[24].mxu0  ;;  %v524_v58 = vpop.f32.mrb[24].mxu1 }
 0x117   : > { %v2220_v54 = vpop.f32.mrb[25].mxu0  ;;  %v547_v59 = vadd.f32 %v538_v46, %v524_v58  ;;  %v2202_v60 = vpop.f32.mrb[25].mxu1 }
 0x118   : > { %v684_v61 = vpop.f32.mrb[26].mxu0  ;;  %v701_v62 = vld [vmem:[#allocation2 + $0x30] sm:$0xff]  ;;  %v527_v63 = vpop.f32.mrb[26].mxu1 }
 0x119   : > { %v2221_v0 = vpop.f32.mrb[27].mxu0  ;;  %556 = vst.msk [vmem:[#allocation2 + $0x40] sm:$0x3f] %vm360_vm8, %v547_v59  ;;  %v710_v2 = vadd.f32 %v701_v62, %v681_v57  ;;  %v2203_v3 = vpop.f32.mrb[27].mxu1 }
 0x11a   : > { %v702_v45 = vld [vmem:[#allocation2 + $0x38] sm:$0xff]  ;;  %v867_v48 = vld [vmem:[#allocation2 + $0x20] sm:$0xff] }
 0x11b   : > { %719 = vst.msk [vmem:[#allocation2 + $0x30] sm:$0xff] %vm351_vm7, %v710_v2  ;;  %v711_v55 = vadd.f32 %v702_v45, %v684_v61 }
 0x11c   : > { %v868_v21 = vld [vmem:[#allocation2 + $0x28] sm:$0xff] }
 0x11d   : > { %720 = vst.msk [vmem:[#allocation2 + $0x38] sm:$0xff] %vm351_vm7, %v711_v55 }
 0x11e   : > { %v689_v4 = vpop.f32.mrb[28].mxu0  ;;  %v825_v5 = vpop.f32.mrb[28].mxu1 }
 0x11f   : > { %v2224_v7 = vpop.f32.mrb[29].mxu0  ;;  %v872_v8 = vadd.f32 %v863_v6, %v825_v5  ;;  %v2230_v9 = vpop.f32.mrb[29].mxu1 }
 0x120   : > { %v692_v10 = vpop.f32.mrb[30].mxu0  ;;  %v703_v11 = vld [vmem:[#allocation2 + $0x40] sm:$0x3f]  ;;  %v828_v12 = vpop.f32.mrb[30].mxu1 }
 0x121   : > { %v2225_v14 = vpop.f32.mrb[31].mxu0  ;;  %v712_v15 = vadd.f32 %v703_v11, %v689_v4  ;;  %881 = vst.msk [vmem:[#allocation2] sm:$0xff] %vm351_vm7, %v872_v8  ;;  %v873_v16 = vadd.f32 %v864_v13, %v828_v12  ;;  %v2231_v17 = vpop.f32.mrb[31].mxu1 }
 0x122   : > { %v869_v51 = vld [vmem:[#allocation2 + $0x30] sm:$0xff] }
 0x123   : > { %721 = vst.msk [vmem:[#allocation2 + $0x40] sm:$0x3f] %vm360_vm8, %v712_v15 }
 0x124   : > { %882 = vst.msk [vmem:[#allocation2 + $0x8] sm:$0xff] %vm351_vm7, %v873_v16  ;;  %v870_v60 = vld [vmem:[#allocation2 + $0x38] sm:$0xff] }
 0x126   : > { %v1028_v19 = vpop.f32.mrb[32].mxu0  ;;  %v833_v20 = vpop.f32.mrb[32].mxu1 }
 0x127   : > { %v2252_v24 = vpop.f32.mrb[33].mxu0  ;;  %v874_v25 = vadd.f32 %v865_v23, %v833_v20  ;;  %v2234_v26 = vpop.f32.mrb[33].mxu1 }
 0x128   : > { %v1031_v27 = vpop.f32.mrb[34].mxu0  ;;  %v1066_v29 = vld [vmem:[#allocation2] sm:$0xff]  ;;  %v836_v30 = vpop.f32.mrb[34].mxu1 }
 0x129   : > { %v2253_v33 = vpop.f32.mrb[35].mxu0  ;;  %883 = vst.msk [vmem:[#allocation2 + $0x10] sm:$0xff] %vm351_vm7, %v874_v25  ;;  %v1075_v37 = vadd.f32 %v1066_v29, %v1028_v19  ;;  %v875_v40 = vadd.f32 %v866_v31, %v836_v30  ;;  %v2235_v41 = vpop.f32.mrb[35].mxu1 }
 0x12a   : > { %v871_v4 = vld [vmem:[#allocation2 + $0x40] sm:$0x3f] }
 0x12b   : > { %v1067_v42 = vld [vmem:[#allocation2 + $0x8] sm:$0xff]  ;;  %1084 = vst.msk [vmem:[#allocation2] sm:$0xff] %vm351_vm7, %v1075_v37  ;;  %884 = vst.msk [vmem:[#allocation2 + $0x18] sm:$0xff] %vm351_vm7, %v875_v40 }
 0x12c   : > { %v1076_v43 = vadd.f32 %v1067_v42, %v1031_v27 }
 0x12e   : > { %1085 = vst.msk [vmem:[#allocation2 + $0x8] sm:$0xff] %vm351_vm7, %v1076_v43  ;;  %v1036_v44 = vpop.f32.mrb[36].mxu0  ;;  %v841_v47 = vpop.f32.mrb[36].mxu1 }
 0x12f   : > { %v2256_v49 = vpop.f32.mrb[37].mxu0  ;;  %v876_v52 = vadd.f32 %v867_v48, %v841_v47  ;;  %v2238_v53 = vpop.f32.mrb[37].mxu1 }
 0x130   : > { %v1039_v18 = vpop.f32.mrb[38].mxu0  ;;  %v1068_v22 = vld [vmem:[#allocation2 + $0x10] sm:$0xff]  ;;  %v844_v28 = vpop.f32.mrb[38].mxu1 }
 0x131   : > { %v2257_v32 = vpop.f32.mrb[39].mxu0  ;;  %885 = vst.msk [vmem:[#allocation2 + $0x20] sm:$0xff] %vm351_vm7, %v876_v52  ;;  %v1077_v35 = vadd.f32 %v1068_v22, %v1036_v44  ;;  %v877_v36 = vadd.f32 %v868_v21, %v844_v28  ;;  %v2239_v38 = vpop.f32.mrb[39].mxu1 }
 0x132   : > { %v1069_v50 = vld [vmem:[#allocation2 + $0x18] sm:$0xff]  ;;  %v1234_v19 = vld [vmem:[#allocation2] sm:$0xff] }
 0x133   : > { %1086 = vst.msk [vmem:[#allocation2 + $0x10] sm:$0xff] %vm351_vm7, %v1077_v35  ;;  %886 = vst.msk [vmem:[#allocation2 + $0x28] sm:$0xff] %vm351_vm7, %v877_v36  ;;  %v1078_v1 = vadd.f32 %v1069_v50, %v1039_v18 }
 0x135   : > { %1087 = vst.msk [vmem:[#allocation2 + $0x18] sm:$0xff] %vm351_vm7, %v1078_v1  ;;  %v1235_v29 = vld [vmem:[#allocation2 + $0x8] sm:$0xff] }
 0x136   : > { %v1044_v34 = vpop.f32.mrb[40].mxu0  ;;  %v849_v39 = vpop.f32.mrb[40].mxu1 }
 0x137   : > { %v2260_v56 = vpop.f32.mrb[41].mxu0  ;;  %v878_v57 = vadd.f32 %v869_v51, %v849_v39  ;;  %v2242_v58 = vpop.f32.mrb[41].mxu1 }
 0x138   : > { %v1047_v46 = vpop.f32.mrb[42].mxu0  ;;  %v1070_v54 = vld [vmem:[#allocation2 + $0x20] sm:$0xff]  ;;  %v852_v59 = vpop.f32.mrb[42].mxu1 }
 0x139   : > { %v2261_v61 = vpop.f32.mrb[43].mxu0  ;;  %887 = vst.msk [vmem:[#allocation2 + $0x30] sm:$0xff] %vm351_vm7, %v878_v57  ;;  %v1079_v62 = vadd.f32 %v1070_v54, %v1044_v34  ;;  %v879_v63 = vadd.f32 %v870_v60, %v852_v59  ;;  %v2243_v0 = vpop.f32.mrb[43].mxu1 }
 0x13a   : > { %v1071_v2 = vld [vmem:[#allocation2 + $0x28] sm:$0xff]  ;;  %v1236_v42 = vld [vmem:[#allocation2 + $0x10] sm:$0xff] }
 0x13b   : > { %1088 = vst.msk [vmem:[#allocation2 + $0x20] sm:$0xff] %vm351_vm7, %v1079_v62  ;;  %888 = vst.msk [vmem:[#allocation2 + $0x38] sm:$0xff] %vm351_vm7, %v879_v63  ;;  %v1080_v3 = vadd.f32 %v1071_v2, %v1047_v46 }
 0x13c   : > { %v1237_v53 = vld [vmem:[#allocation2 + $0x18] sm:$0xff] }
 0x13d   : > { %1089 = vst.msk [vmem:[#allocation2 + $0x28] sm:$0xff] %vm351_vm7, %v1080_v3 }
 0x13e   : > { %v1052_v45 = vpop.f32.mrb[44].mxu0  ;;  %v857_v55 = vpop.f32.mrb[44].mxu1 }
 0x13f   : > { %v2264_v5 = vpop.f32.mrb[45].mxu0  ;;  %v880_v6 = vadd.f32 %v871_v4, %v857_v55  ;;  %v2246_v7 = vpop.f32.mrb[45].mxu1 }
 0x140   : > { %v1055_v8 = vpop.f32.mrb[46].mxu0  ;;  %v1072_v9 = vld [vmem:[#allocation2 + $0x30] sm:$0xff]  ;;  %v860_v10 = vpop.f32.mrb[46].mxu1 }
 0x141   : > { %v2265_v11 = vpop.f32.mrb[47].mxu0  ;;  %889 = vst.msk [vmem:[#allocation2 + $0x40] sm:$0x3f] %vm360_vm8, %v880_v6  ;;  %v1081_v12 = vadd.f32 %v1072_v9, %v1052_v45  ;;  %v2247_v13 = vpop.f32.mrb[47].mxu1 }
 0x142   : > { %v1073_v14 = vld [vmem:[#allocation2 + $0x38] sm:$0xff]  ;;  %v1238_v50 = vld [vmem:[#allocation2 + $0x20] sm:$0xff] }
 0x143   : > { %1090 = vst.msk [vmem:[#allocation2 + $0x30] sm:$0xff] %vm351_vm7, %v1081_v12  ;;  %v1082_v15 = vadd.f32 %v1073_v14, %v1055_v8 }
 0x144   : > { %v1239_v58 = vld [vmem:[#allocation2 + $0x28] sm:$0xff] }
 0x145   : > { %1091 = vst.msk [vmem:[#allocation2 + $0x38] sm:$0xff] %vm351_vm7, %v1082_v15 }
 0x146   : > { %v1060_v16 = vpop.f32.mrb[48].mxu0  ;;  %v1196_v17 = vpop.f32.mrb[48].mxu1 }
 0x147   : > { %v2268_v20 = vpop.f32.mrb[49].mxu0  ;;  %v1243_v23 = vadd.f32 %v1234_v19, %v1196_v17  ;;  %v2274_v24 = vpop.f32.mrb[49].mxu1 }
 0x148   : > { %v1063_v25 = vpop.f32.mrb[50].mxu0  ;;  %v1074_v26 = vld [vmem:[#allocation2 + $0x40] sm:$0x3f]  ;;  %v1199_v27 = vpop.f32.mrb[50].mxu1 }
 0x149   : > { %v2269_v30 = vpop.f32.mrb[51].mxu0  ;;  %v1083_v31 = vadd.f32 %v1074_v26, %v1060_v16  ;;  %1252 = vst.msk [vmem:[#allocation2] sm:$0xff] %vm351_vm7, %v1243_v23  ;;  %v1244_v33 = vadd.f32 %v1235_v29, %v1199_v27  ;;  %v2275_v37 = vpop.f32.mrb[51].mxu1 }
 0x14a   : > { %v1240_v2 = vld [vmem:[#allocation2 + $0x30] sm:$0xff] }
 0x14b   : > { %1092 = vst.msk [vmem:[#allocation2 + $0x40] sm:$0x3f] %vm360_vm8, %v1083_v31 }
 0x14c   : > { %1253 = vst.msk [vmem:[#allocation2 + $0x8] sm:$0xff] %vm351_vm7, %v1244_v33  ;;  %v1241_v7 = vld [vmem:[#allocation2 + $0x38] sm:$0xff] }
 0x14e   : > { %v1351_v40 = vpop.f32.mrb[52].mxu0  ;;  %v1204_v41 = vpop.f32.mrb[52].mxu1 }
 0x14f   : > { %v2296_v43 = vpop.f32.mrb[53].mxu0  ;;  %v1245_v44 = vadd.f32 %v1236_v42, %v1204_v41  ;;  %v2278_v47 = vpop.f32.mrb[53].mxu1 }
 0x150   : > { %v1354_v48 = vpop.f32.mrb[54].mxu0  ;;  %v1389_v49 = vld [vmem:[#allocation2] sm:$0xff]  ;;  %v1207_v52 = vpop.f32.mrb[54].mxu1 }
 0x151   : > { %v2297_v18 = vpop.f32.mrb[55].mxu0  ;;  %1254 = vst.msk [vmem:[#allocation2 + $0x10] sm:$0xff] %vm351_vm7, %v1245_v44  ;;  %v1398_v22 = vadd.f32 %v1389_v49, %v1351_v40  ;;  %v1246_v28 = vadd.f32 %v1237_v53, %v1207_v52  ;;  %v2279_v21 = vpop.f32.mrb[55].mxu1 }
 0x152   : > { %v1242_v16 = vld [vmem:[#allocation2 + $0x40] sm:$0x3f] }
 0x153   : > { %v1390_v32 = vld [vmem:[#allocation2 + $0x8] sm:$0xff]  ;;  %1407 = vst.msk [vmem:[#allocation2] sm:$0xff] %vm351_vm7, %v1398_v22  ;;  %1255 = vst.msk [vmem:[#allocation2 + $0x18] sm:$0xff] %vm351_vm7, %v1246_v28 }
 0x154   : > { %v1399_v35 = vadd.f32 %v1390_v32, %v1354_v48 }
 0x156   : > { %1408 = vst.msk [vmem:[#allocation2 + $0x8] sm:$0xff] %vm351_vm7, %v1399_v35  ;;  %v1359_v36 = vpop.f32.mrb[56].mxu0  ;;  %v1212_v38 = vpop.f32.mrb[56].mxu1 }
 0x157   : > { %v2300_v1 = vpop.f32.mrb[57].mxu0  ;;  %v1247_v34 = vadd.f32 %v1238_v50, %v1212_v38  ;;  %v2282_v39 = vpop.f32.mrb[57].mxu1 }
 0x158   : > { %v1362_v51 = vpop.f32.mrb[58].mxu0  ;;  %v1391_v56 = vld [vmem:[#allocation2 + $0x10] sm:$0xff]  ;;  %v1215_v57 = vpop.f32.mrb[58].mxu1 }
 0x159   : > { %v2301_v46 = vpop.f32.mrb[59].mxu0  ;;  %1256 = vst.msk [vmem:[#allocation2 + $0x20] sm:$0xff] %vm351_vm7, %v1247_v34  ;;  %v1400_v54 = vadd.f32 %v1391_v56, %v1359_v36  ;;  %v1248_v59 = vadd.f32 %v1239_v58, %v1215_v57  ;;  %v2283_v60 = vpop.f32.mrb[59].mxu1 }
 0x15a   : > { %v1392_v61 = vld [vmem:[#allocation2 + $0x18] sm:$0xff]  ;;  %v1583_v40 = vld [vmem:[#allocation2] sm:$0xff] }
 0x15b   : > { %1409 = vst.msk [vmem:[#allocation2 + $0x10] sm:$0xff] %vm351_vm7, %v1400_v54  ;;  %1257 = vst.msk [vmem:[#allocation2 + $0x28] sm:$0xff] %vm351_vm7, %v1248_v59  ;;  %v1401_v62 = vadd.f32 %v1392_v61, %v1362_v51 }
 0x15d   : > { %1410 = vst.msk [vmem:[#allocation2 + $0x18] sm:$0xff] %vm351_vm7, %v1401_v62  ;;  %v1584_v49 = vld [vmem:[#allocation2 + $0x8] sm:$0xff] }
 0x15e   : > { %v1367_v63 = vpop.f32.mrb[60].mxu0  ;;  %v1220_v0 = vpop.f32.mrb[60].mxu1 }
 0x15f   : > { %v2304_v3 = vpop.f32.mrb[61].mxu0  ;;  %v1249_v45 = vadd.f32 %v1240_v2, %v1220_v0  ;;  %v2286_v55 = vpop.f32.mrb[61].mxu1 }
 0x160   : > { %v1370_v4 = vpop.f32.mrb[62].mxu0  ;;  %v1393_v5 = vld [vmem:[#allocation2 + $0x20] sm:$0xff]  ;;  %v1223_v6 = vpop.f32.mrb[62].mxu1 }
 0x161   : > { %v2305_v8 = vpop.f32.mrb[63].mxu0  ;;  %1258 = vst.msk [vmem:[#allocation2 + $0x30] sm:$0xff] %vm351_vm7, %v1249_v45  ;;  %v1402_v9 = vadd.f32 %v1393_v5, %v1367_v63  ;;  %v1250_v10 = vadd.f32 %v1241_v7, %v1223_v6  ;;  %v2287_v11 = vpop.f32.mrb[63].mxu1  ;;  %v2892_v3 = vld [vmem:[%s2949_s2] ss:$0 sm:$0xff] }
 0x162   : > { %v1394_v12 = vld [vmem:[#allocation2 + $0x28] sm:$0xff]  ;;  %v1585_v32 = vld [vmem:[#allocation2 + $0x10] sm:$0xff] }
 0x163   : > { %1411 = vst.msk [vmem:[#allocation2 + $0x20] sm:$0xff] %vm351_vm7, %v1402_v9  ;;  %1259 = vst.msk [vmem:[#allocation2 + $0x38] sm:$0xff] %vm351_vm7, %v1250_v10  ;;  %v1403_v13 = vadd.f32 %v1394_v12, %v1370_v4 }
 0x164   : > { %v1586_v39 = vld [vmem:[#allocation2 + $0x18] sm:$0xff] }
 0x165   : > { %1412 = vst.msk [vmem:[#allocation2 + $0x28] sm:$0xff] %vm351_vm7, %v1403_v13 }
 0x166   : > { %v1375_v14 = vpop.f32.mrb[64].mxu0  ;;  %v1228_v15 = vpop.f32.mrb[64].mxu1 }
 0x167   : > { %v2308_v17 = vpop.f32.mrb[65].mxu0  ;;  %v1251_v19 = vadd.f32 %v1242_v16, %v1228_v15  ;;  %v2290_v20 = vpop.f32.mrb[65].mxu1 }
 0x168   : > { %v1378_v23 = vpop.f32.mrb[66].mxu0  ;;  %v1395_v24 = vld [vmem:[#allocation2 + $0x30] sm:$0xff]  ;;  %v1231_v25 = vpop.f32.mrb[66].mxu1 }
 0x169   : > { %v2309_v26 = vpop.f32.mrb[67].mxu0  ;;  %1260 = vst.msk [vmem:[#allocation2 + $0x40] sm:$0x3f] %vm360_vm8, %v1251_v19  ;;  %v1404_v27 = vadd.f32 %v1395_v24, %v1375_v14  ;;  %v2291_v29 = vpop.f32.mrb[67].mxu1 }
 0x16a   : > { %v1396_v30 = vld [vmem:[#allocation2 + $0x38] sm:$0xff]  ;;  %v1587_v61 = vld [vmem:[#allocation2 + $0x20] sm:$0xff] }
 0x16b   : > { %1413 = vst.msk [vmem:[#allocation2 + $0x30] sm:$0xff] %vm351_vm7, %v1404_v27  ;;  %v1405_v31 = vadd.f32 %v1396_v30, %v1378_v23 }
 0x16c   : > { %v1588_v4 = vld [vmem:[#allocation2 + $0x28] sm:$0xff] }
 0x16d   : > { %1414 = vst.msk [vmem:[#allocation2 + $0x38] sm:$0xff] %vm351_vm7, %v1405_v31 }
 0x16e   : > { %v1383_v33 = vpop.f32.mrb[68].mxu0  ;;  %v1545_v37 = vpop.f32.mrb[68].mxu1 }
 0x16f   : > { %v2312_v41 = vpop.f32.mrb[69].mxu0  ;;  %v1592_v42 = vadd.f32 %v1583_v40, %v1545_v37  ;;  %v2318_v43 = vpop.f32.mrb[69].mxu1 }
 0x170   : > { %v1386_v44 = vpop.f32.mrb[70].mxu0  ;;  %v1397_v47 = vld [vmem:[#allocation2 + $0x40] sm:$0x3f]  ;;  %v1548_v48 = vpop.f32.mrb[70].mxu1 }
 0x171   : > { %v2313_v52 = vpop.f32.mrb[71].mxu0  ;;  %v1406_v53 = vadd.f32 %v1397_v47, %v1383_v33  ;;  %1601 = vst.msk [vmem:[#allocation2] sm:$0xff] %vm351_vm7, %v1592_v42  ;;  %v1593_v18 = vadd.f32 %v1584_v49, %v1548_v48  ;;  %v2319_v22 = vpop.f32.mrb[71].mxu1 }
 0x172   : > { %v1589_v19 = vld [vmem:[#allocation2 + $0x30] sm:$0xff] }
 0x173   : > { %1415 = vst.msk [vmem:[#allocation2 + $0x40] sm:$0x3f] %vm360_vm8, %v1406_v53 }
 0x174   : > { %1602 = vst.msk [vmem:[#allocation2 + $0x8] sm:$0xff] %vm351_vm7, %v1593_v18  ;;  %v1590_v31 = vld [vmem:[#allocation2 + $0x38] sm:$0xff] }
 0x176   : > { %v1709_v28 = vpop.f32.mrb[72].mxu0  ;;  %v1553_v21 = vpop.f32.mrb[72].mxu1 }
 0x177   : > { %v2340_v35 = vpop.f32.mrb[73].mxu0  ;;  %v1594_v36 = vadd.f32 %v1585_v32, %v1553_v21  ;;  %v2322_v38 = vpop.f32.mrb[73].mxu1 }
 0x178   : > { %v1712_v50 = vpop.f32.mrb[74].mxu0  ;;  %v1747_v1 = vld [vmem:[#allocation2] sm:$0xff]  ;;  %v1556_v34 = vpop.f32.mrb[74].mxu1 }
 0x179   : > { %v2341_v51 = vpop.f32.mrb[75].mxu0  ;;  %1603 = vst.msk [vmem:[#allocation2 + $0x10] sm:$0xff] %vm351_vm7, %v1594_v36  ;;  %v1756_v56 = vadd.f32 %v1747_v1, %v1709_v28  ;;  %v1595_v57 = vadd.f32 %v1586_v39, %v1556_v34  ;;  %v2323_v58 = vpop.f32.mrb[75].mxu1 }
 0x17a   : > { %v1591_v28 = vld [vmem:[#allocation2 + $0x40] sm:$0x3f] }
 0x17b   : > { %v1748_v46 = vld [vmem:[#allocation2 + $0x8] sm:$0xff]  ;;  %1765 = vst.msk [vmem:[#allocation2] sm:$0xff] %vm351_vm7, %v1756_v56  ;;  %1604 = vst.msk [vmem:[#allocation2 + $0x18] sm:$0xff] %vm351_vm7, %v1595_v57 }
 0x17c   : > { %v1757_v54 = vadd.f32 %v1748_v46, %v1712_v50 }
 0x17e   : > { %1766 = vst.msk [vmem:[#allocation2 + $0x8] sm:$0xff] %vm351_vm7, %v1757_v54  ;;  %v1717_v59 = vpop.f32.mrb[76].mxu0  ;;  %v1561_v60 = vpop.f32.mrb[76].mxu1 }
 0x17f   : > { %v2344_v62 = vpop.f32.mrb[77].mxu0  ;;  %v1596_v63 = vadd.f32 %v1587_v61, %v1561_v60  ;;  %v2326_v0 = vpop.f32.mrb[77].mxu1 }
 0x180   : > { %v1720_v2 = vpop.f32.mrb[78].mxu0  ;;  %v1749_v45 = vld [vmem:[#allocation2 + $0x10] sm:$0xff]  ;;  %v1564_v55 = vpop.f32.mrb[78].mxu1 }
 0x181   : > { %v2345_v5 = vpop.f32.mrb[79].mxu0  ;;  %1605 = vst.msk [vmem:[#allocation2 + $0x20] sm:$0xff] %vm351_vm7, %v1596_v63  ;;  %v1758_v6 = vadd.f32 %v1749_v45, %v1717_v59  ;;  %v1597_v7 = vadd.f32 %v1588_v4, %v1564_v55  ;;  %v2327_v8 = vpop.f32.mrb[79].mxu1 }
 0x182   : > { %v1774_v9 = vld [vmem:[#allocation2] sm:$0xff]  ;;  %v1750_v10 = vld [vmem:[#allocation2 + $0x18] sm:$0xff] }
 0x183   : > { %v1790_v11 = vadd.f32 %v2892_v3, %v1774_v9  ;;  %1767 = vst.msk [vmem:[#allocation2 + $0x10] sm:$0xff] %vm351_vm7, %v1758_v6  ;;  %1606 = vst.msk [vmem:[#allocation2 + $0x28] sm:$0xff] %vm351_vm7, %v1597_v7  ;;  %v1759_v12 = vadd.f32 %v1750_v10, %v1720_v2 }
 0x185   : > { %v1775_v13 = vld [vmem:[#allocation2 + $0x8] sm:$0xff]  ;;  %v1799_v14 = vmax.f32 %v1790_v11, 0.0  ;;  %1768 = vst.msk [vmem:[#allocation2 + $0x18] sm:$0xff] %vm351_vm7, %v1759_v12 }
 0x186   : > { %v1791_v15 = vadd.f32 %v2892_v3, %v1775_v13  ;;  %v1725_v16 = vpop.f32.mrb[80].mxu0  ;;  %v1569_v17 = vpop.f32.mrb[80].mxu1 }
 0x187   : > { %v2348_v20 = vpop.f32.mrb[81].mxu0  ;;  %v2097_v23 = vpack.c.bf16 %v1799_v14, %v1799_v14  ;;  %v1598_v25 = vadd.f32 %v1589_v19, %v1569_v17  ;;  %v2330_v26 = vpop.f32.mrb[81].mxu1 }
 0x188   : > { %v1800_v24 = vmax.f32 %v1791_v15, 0.0  ;;  %v1728_v27 = vpop.f32.mrb[82].mxu0  ;;  %v1751_v29 = vld [vmem:[#allocation2 + $0x20] sm:$0xff]  ;;  %v1572_v30 = vpop.f32.mrb[82].mxu1 }
 0x189   : > { %v2349_v33 = vpop.f32.mrb[83].mxu0  ;;  %1846 = vst.msk [vmem:[%s2904_s12] sm:$0xf] %vm1845_vm9, %v2097_v23  ;;  %v1760_v40 = vadd.f32 %v1751_v29, %v1725_v16  ;;  %v1599_v41 = vadd.f32 %v1590_v31, %v1572_v30  ;;  %v2331_v42 = vpop.f32.mrb[83].mxu1 }
 0x18a   : > { %v2098_v37 = vpack.c.bf16 %v1800_v24, %v1800_v24  ;;  %1607 = vst.msk [vmem:[#allocation2 + $0x30] sm:$0xff] %vm351_vm7, %v1598_v25  ;;  %v1776_v43 = vld [vmem:[#allocation2 + $0x10] sm:$0xff]  ;;  %v1752_v44 = vld [vmem:[#allocation2 + $0x28] sm:$0xff] }
 0x18b   : > { %v1792_v47 = vadd.f32 %v2892_v3, %v1776_v43  ;;  %1769 = vst.msk [vmem:[#allocation2 + $0x20] sm:$0xff] %vm351_vm7, %v1760_v40  ;;  %1608 = vst.msk [vmem:[#allocation2 + $0x38] sm:$0xff] %vm351_vm7, %v1599_v41  ;;  %v1761_v48 = vadd.f32 %v1752_v44, %v1728_v27 }
 0x18c   : > { %1847 = vst.msk [vmem:[%s2904_s12 + $0x4] sm:$0xf] %vm1845_vm9, %v2098_v37  ;;  %v1777_v49 = vld [vmem:[#allocation2 + $0x18] sm:$0xff] }
 0x18d   : > { %v1801_v52 = vmax.f32 %v1792_v47, 0.0  ;;  %v1793_v53 = vadd.f32 %v2892_v3, %v1777_v49  ;;  %1770 = vst.msk [vmem:[#allocation2 + $0x28] sm:$0xff] %vm351_vm7, %v1761_v48 }
 0x18e   : > { %v1733_v18 = vpop.f32.mrb[84].mxu0  ;;  %v1577_v22 = vpop.f32.mrb[84].mxu1 }
 0x18f   : > { %v2352_v21 = vpop.f32.mrb[85].mxu0  ;;  %v2099_v32 = vpack.c.bf16 %v1801_v52, %v1801_v52  ;;  %v1802_v35 = vmax.f32 %v1793_v53, 0.0  ;;  %v1600_v36 = vadd.f32 %v1591_v28, %v1577_v22  ;;  %v2334_v38 = vpop.f32.mrb[85].mxu1 }
 0x190   : > { %v1736_v50 = vpop.f32.mrb[86].mxu0  ;;  %v1580_v34 = vpop.f32.mrb[86].mxu1 }
 0x191   : > { %v1753_v1 = vld [vmem:[#allocation2 + $0x30] sm:$0xff]  ;;  %v2353_v39 = vpop.f32.mrb[87].mxu0  ;;  %1848 = vst.msk [vmem:[%s2904_s12 + $0x8] sm:$0xf] %vm1845_vm9, %v2099_v32  ;;  %v2100_v51 = vpack.c.bf16 %v1802_v35, %v1802_v35  ;;  %v2335_v57 = vpop.f32.mrb[87].mxu1 }
 0x192   : > { %1609 = vst.msk [vmem:[#allocation2 + $0x40] sm:$0x3f] %vm360_vm8, %v1600_v36  ;;  %v1762_v56 = vadd.f32 %v1753_v1, %v1733_v18  ;;  %v1778_v58 = vld [vmem:[#allocation2 + $0x20] sm:$0xff]  ;;  %v1754_v46 = vld [vmem:[#allocation2 + $0x38] sm:$0xff] }
 0x193   : > { %1849 = vst.msk [vmem:[%s2904_s12 + $0xc] sm:$0xf] %vm1845_vm9, %v2100_v51  ;;  %v1794_v54 = vadd.f32 %v2892_v3, %v1778_v58  ;;  %v1763_v59 = vadd.f32 %v1754_v46, %v1736_v50 }
 0x194   : > { %1771 = vst.msk [vmem:[#allocation2 + $0x30] sm:$0xff] %vm351_vm7, %v1762_v56  ;;  %v1779_v60 = vld [vmem:[#allocation2 + $0x28] sm:$0xff] }
 0x195   : > { %v1803_v61 = vmax.f32 %v1794_v54, 0.0  ;;  %v1795_v62 = vadd.f32 %v2892_v3, %v1779_v60  ;;  %1772 = vst.msk [vmem:[#allocation2 + $0x38] sm:$0xff] %vm351_vm7, %v1763_v59 }
 0x196   : > { %v1741_v63 = vpop.f32.mrb[88].mxu0 }
 0x197   : > { %v2356_v0 = vpop.f32.mrb[89].mxu0  ;;  %v2101_v2 = vpack.c.bf16 %v1803_v61, %v1803_v61  ;;  %v1804_v45 = vmax.f32 %v1795_v62, 0.0 }
 0x198   : > { %v1744_v55 = vpop.f32.mrb[90].mxu0 }
 0x199   : > { %v1755_v4 = vld [vmem:[#allocation2 + $0x40] sm:$0x3f]  ;;  %v2357_v5 = vpop.f32.mrb[91].mxu0  ;;  %1850 = vst.msk [vmem:[%s2904_s12 + $0x10] sm:$0xf] %vm1845_vm9, %v2101_v2  ;;  %v2102_v6 = vpack.c.bf16 %v1804_v45, %v1804_v45 }
 0x19a   : > { %v1764_v7 = vadd.f32 %v1755_v4, %v1741_v63 }
 0x19b   : > { %v1780_v8 = vld [vmem:[#allocation2 + $0x30] sm:$0xff]  ;;  %1851 = vst.msk [vmem:[%s2904_s12 + $0x14] sm:$0xf] %vm1845_vm9, %v2102_v6 }
 0x19c   : > { %v1796_v9 = vadd.f32 %v2892_v3, %v1780_v8  ;;  %1773 = vst.msk [vmem:[#allocation2 + $0x40] sm:$0x3f] %vm360_vm8, %v1764_v7  ;;  %v1781_v10 = vld [vmem:[#allocation2 + $0x38] sm:$0xff] }
 0x19d   : > { %v1797_v12 = vadd.f32 %v2892_v3, %v1781_v10 }
 0x19e   : > { %v1805_v11 = vmax.f32 %v1796_v9, 0.0 }
 0x19f   : > { %v1806_v14 = vmax.f32 %v1797_v12, 0.0 }
 0x1a0   : > { %v2103_v13 = vpack.c.bf16 %v1805_v11, %v1805_v11 }
 0x1a1   : > { %v2104_v15 = vpack.c.bf16 %v1806_v14, %v1806_v14 }
 0x1a2   : > { %1852 = vst.msk [vmem:[%s2904_s12 + $0x18] sm:$0xf] %vm1845_vm9, %v2103_v13 }
 0x1a3   : > { %v1782_v16 = vld [vmem:[#allocation2 + $0x40] sm:$0x3f]  ;;  %1853 = vst.msk [vmem:[%s2904_s12 + $0x1c] sm:$0xf] %vm1845_vm9, %v2104_v15 }
 0x1a4   : > { %v1798_v17 = vadd.f32 %v2892_v3, %v1782_v16 }
 0x1a6   : > { %v1807_v19 = vmax.f32 %v1798_v17, 0.0 }
 0x1a8   : > { %v2105_v20 = vpack.c.bf16 %v1807_v19, %v1807_v19 }
 0x1aa   : > { %1855 = vst.msk [vmem:[%s2904_s12 + $0x20] sm:$0x7] %vm1854_vm10, %v2105_v20 }
 0x1ab PF: > { %s13_s14 = sadd.s32 1, %s2464_s14   ;;  %s2951_s12 = smov %s2460_s13 }
 0x1ac   : > { %p10_p5 = scmp.ge.s32.totalorder %s13_s14, 4   ;;  %s2952_s13 = smov %s2954_s15 }
 0x1ae   :  { %12 = sbr.rel (!%p10_p5) target bundleno = 2 (0x2), region = 76 }

</bundles_post_ra>
